<compile_context>
chip_gen: v5e
topology: v5e:2x2
jax: 0.10.0
libtpu: 0.0.40
codegen_flags: <defaults>
</compile_context>

<pallas_src>
import functools

import jax
import jax.numpy as jnp
from jax.experimental import pallas as pl
from jax.experimental.pallas import tpu as pltpu

N_EMBD = 64
N_HEAD = 8
HEAD_SIZE = N_EMBD // N_HEAD
LN_EPS = 1e-5
NEG_INF = -1e30          # finite large-negative additive mask (exp-safe)


def _layernorm(v, g, b):
    mu = jnp.mean(v, axis=-1, keepdims=True)
    var = jnp.mean((v - mu) ** 2, axis=-1, keepdims=True)
    return (v - mu) * jax.lax.rsqrt(var + LN_EPS) * g + b


def _block_kernel(x_ref,
                  ln1g_ref, ln1b_ref,
                  wqkv_ref, wproj_ref, bproj_ref,
                  ln2g_ref, ln2b_ref,
                  w1_ref, b1_ref, w2_ref, b2_ref,
                  o_ref,
                  *, bb, seq):
    C, H, hs = N_EMBD, N_HEAD, HEAD_SIZE
    M = bb * seq

    x = x_ref[...].astype(jnp.float32)                          # (M, C)

    # ---- LayerNorm 1 (f32 statistics) ----
    h = _layernorm(x, ln1g_ref[...], ln1b_ref[...])

    # ---- Head-batched QKV projection ----
    # w_qkv is packed per head as (H, C, 3*hs) with the n_embd**-0.5 score
    # scale pre-folded into the Q columns (wrapper-side).  Broadcasting the
    # activations over the head axis keeps the subsequent head split as pure
    # leading-axis reshapes (no cross-lane transpose inside the kernel).
    hb = jnp.broadcast_to(h.astype(jnp.bfloat16)[None], (H, M, C))
    qkv = jnp.einsum('hmc,hcn->hmn', hb, wqkv_ref[...],
                     preferred_element_type=jnp.float32)        # (H, M, 3*hs)

    # Heads fold straight into the attention batch: (H, M, hs) -> (H*bb, T, hs)
    q = qkv[:, :, 0 * hs:1 * hs].reshape(H * bb, seq, hs)       # f32
    k = qkv[:, :, 1 * hs:2 * hs].reshape(H * bb, seq, hs)
    v = qkv[:, :, 2 * hs:3 * hs].reshape(H * bb, seq, hs)

    # ---- Causal additive bias, built once, shared by all heads ----
    row = jax.lax.broadcasted_iota(jnp.int32, (seq, seq), 0)
    col = jax.lax.broadcasted_iota(jnp.int32, (seq, seq), 1)
    bias = jnp.where(col <= row, jnp.float32(0.0), jnp.float32(NEG_INF))

    # ---- Attention for ALL heads in one batched pass (f32 softmax stats) ----
    s = jnp.einsum('bqd,bkd->bqk', q, k,
                   preferred_element_type=jnp.float32) + bias   # (H*bb, T, T)
    s = s - jnp.max(s, axis=-1, keepdims=True)
    p = jnp.exp(s)
    p = p * pl.reciprocal(jnp.sum(p, axis=-1, keepdims=True), approx=True)
    oh = jnp.einsum('bqk,bkd->bqd', p, v,
                    preferred_element_type=jnp.float32)         # (H*bb, T, hs)

    # ---- Merge heads back onto the lane axis; single K=C output projection --
    oh3 = oh.reshape(H, M, hs)
    cat = jnp.concatenate([oh3[i] for i in range(H)], axis=-1)  # (M, C)
    sa = jnp.dot(cat.astype(jnp.bfloat16), wproj_ref[...],
                 preferred_element_type=jnp.float32) + bproj_ref[...]

    x1 = x + sa                                                 # residual 1

    # ---- LayerNorm 2 + FeedForward: Linear(C,4C) -> ReLU -> Linear(4C,C) ----
    h2 = _layernorm(x1, ln2g_ref[...], ln2b_ref[...]).astype(jnp.bfloat16)
    f = jnp.dot(h2, w1_ref[...],
                preferred_element_type=jnp.float32) + b1_ref[...]
    f = jnp.maximum(f, 0.0).astype(jnp.bfloat16)
    f = jnp.dot(f, w2_ref[...],
                preferred_element_type=jnp.float32) + b2_ref[...]

    o_ref[...] = (x1 + f).astype(o_ref.dtype)                   # residual 2


def _choose_bb(batch, seq):
    """Sequences folded per grid step.

    Small problems -> a single grid step (the grid is a sequential loop on
    single-TC v5e/v6e; per-step overhead ~0.35us dominates tiny blocks).
    Large problems -> >= 2 steps (v7x megacore) with as few, as large steps
    as possible, capped at 4096 rows/step so the compiler-managed f32
    intermediates stay inside scoped VMEM (v7x default 32 MiB of 64 MiB);
    raise vmem_limit_bytes via CompilerParams if this cap is lifted.
    """
    if batch == 1 or batch * seq <= 512:
        return batch                                   # one grid step
    divisors = [d for d in range(1, batch) if batch % d == 0]
    capped = [d for d in divisors if d * seq <= 4096] or [min(divisors)]
    bb = max(capped)
    if (bb * seq) % 8 != 0:        # (8,128) sublane rule for partial blocks
        return batch               # fall back to one full-array block
    return bb


def init_params(key):
    ks = jax.random.split(key, 8)
    C, H, HS = N_EMBD, N_HEAD, HEAD_SIZE
    s = 0.02
    return dict(
        ln1_g=jnp.ones((1, C), jnp.float32),
        ln1_b=jnp.zeros((1, C), jnp.float32),
        wk=s * jax.random.normal(ks[0], (H, C, HS), jnp.float32),
        wq=s * jax.random.normal(ks[1], (H, C, HS), jnp.float32),
        wv=s * jax.random.normal(ks[2], (H, C, HS), jnp.float32),
        wproj=s * jax.random.normal(ks[3], (C, C), jnp.float32),
        bproj=s * jax.random.normal(ks[4], (1, C), jnp.float32),
        ln2_g=jnp.ones((1, C), jnp.float32),
        ln2_b=jnp.zeros((1, C), jnp.float32),
        w1=s * jax.random.normal(ks[5], (C, 4 * C), jnp.float32),
        b1=jnp.zeros((1, 4 * C), jnp.float32),
        w2=s * jax.random.normal(ks[6], (4 * C, C), jnp.float32),
        b2=jnp.zeros((1, C), jnp.float32),
    )


def pack_params(params):
    """One-time packing of parameters into kernel operands.

    Hoisted out of the jitted forward (per review): the concat / casts run
    once, not on every call.  The n_embd**-0.5 score scale (note: the PyTorch
    Head scales by n_embd**-0.5, not head_size**-0.5) is folded into the Q
    columns so the kernel never multiplies scores by a scalar.
    """
    scale = jnp.float32(N_EMBD) ** -0.5
    w_qkv = jnp.concatenate(
        [params["wq"] * scale, params["wk"], params["wv"]],
        axis=-1).astype(jnp.bfloat16)                    # (H, C, 3*hs)
    return dict(
        ln1_g=params["ln1_g"].astype(jnp.float32),
        ln1_b=params["ln1_b"].astype(jnp.float32),
        w_qkv=w_qkv,
        w_proj=params["wproj"].astype(jnp.bfloat16),     # (C, C)
        b_proj=params["bproj"].astype(jnp.float32),      # (1, C)
        ln2_g=params["ln2_g"].astype(jnp.float32),
        ln2_b=params["ln2_b"].astype(jnp.float32),
        w1=params["w1"].astype(jnp.bfloat16),            # (C, 4C)
        b1=params["b1"].astype(jnp.float32),             # (1, 4C)
        w2=params["w2"].astype(jnp.bfloat16),            # (4C, C)
        b2=params["b2"].astype(jnp.float32),             # (1, C)
    )


@jax.jit
def transformer_block(x, packed):
    B, T, C = x.shape
    assert C == N_EMBD
    bb = _choose_bb(B, T)
    grid = (B // bb,)
    m = bb * T

    x2 = x.reshape(B * T, C)   # fold batch into rows

    def full(arr):
        nd = arr.ndim
        return pl.BlockSpec(arr.shape, lambda i, nd=nd: (0,) * nd)

    in_specs = [
        pl.BlockSpec((m, C), lambda i: (i, 0)),          # x row block
        full(packed["ln1_g"]), full(packed["ln1_b"]),
        full(packed["w_qkv"]), full(packed["w_proj"]), full(packed["b_proj"]),
        full(packed["ln2_g"]), full(packed["ln2_b"]),
        full(packed["w1"]), full(packed["b1"]),
        full(packed["w2"]), full(packed["b2"]),
    ]
    out_spec = pl.BlockSpec((m, C), lambda i: (i, 0))

    kernel = functools.partial(_block_kernel, bb=bb, seq=T)

    out2 = pl.pallas_call(
        kernel,
        out_shape=jax.ShapeDtypeStruct((B * T, C), x.dtype),
        grid_spec=pltpu.PrefetchScalarGridSpec(
            num_scalar_prefetch=0,
            grid=grid,
            in_specs=in_specs,
            out_specs=out_spec,
        ),
        compiler_params=pltpu.CompilerParams(
            dimension_semantics=("parallel",)),
    )(x2, packed["ln1_g"], packed["ln1_b"], packed["w_qkv"],
      packed["w_proj"], packed["b_proj"], packed["ln2_g"], packed["ln2_b"],
      packed["w1"], packed["b1"], packed["w2"], packed["b2"])

    return out2.reshape(B, T, C)


def transformer_block_ref(x, p):
    """Pure-JAX f32 reference mirroring the PyTorch module (eval mode)."""
    def ln(v, g, b):
        mu = jnp.mean(v, axis=-1, keepdims=True)
        var = jnp.mean((v - mu) ** 2, axis=-1, keepdims=True)
        return (v - mu) / jnp.sqrt(var + LN_EPS) * g[0] + b[0]

    B, T, C = x.shape
    h = ln(x, p["ln1_g"], p["ln1_b"])
    causal = jnp.tril(jnp.ones((T, T), bool))
    outs = []
    for hd in range(N_HEAD):
        k = h @ p["wk"][hd]
        q = h @ p["wq"][hd]
        v = h @ p["wv"][hd]
        wei = (q @ jnp.swapaxes(k, -1, -2)) * (C ** -0.5)
        wei = jnp.where(causal, wei, -jnp.inf)
        wei = jax.nn.softmax(wei, axis=-1)
        outs.append(wei @ v)
    sa = jnp.concatenate(outs, axis=-1) @ p["wproj"] + p["bproj"][0]
    x = x + sa
    h2 = ln(x, p["ln2_g"], p["ln2_b"])
    ff = jnp.maximum(h2 @ p["w1"] + p["b1"][0], 0.0) @ p["w2"] + p["b2"][0]
    return x + ff


if __name__ == "__main__":
    key = jax.random.PRNGKey(0)
    kx, kp = jax.random.split(key)
    B, T = 2, 8                      # small shapes: batch=2, seq=8, n_embd=64
    x = jax.random.normal(kx, (B, T, N_EMBD), jnp.float32)
    params = init_params(kp)
    packed = pack_params(params)     # one-time weight packing (outside jit)

    out = jax.block_until_ready(transformer_block(x, packed))
    ref = transformer_block_ref(x, params)

    assert out.shape == (B, T, N_EMBD)
    err = float(jnp.max(jnp.abs(out - ref)))
    # bf16 MXU operands + approx reciprocal => small, bounded deviation vs f32
    assert err < 1e-2, f"mismatch vs reference: max abs err = {err}"
    print("KERNEL_OK")
</pallas_src>

<mosaic_0001>
module attributes {stable_mosaic.version = 11 : i64} {
  func.func @_block_kernel(%arg0: i32, %arg1: memref<16x64xf32, #tpu.memory_space<vmem>>, %arg2: memref<1x64xf32, #tpu.memory_space<vmem>>, %arg3: memref<1x64xf32, #tpu.memory_space<vmem>>, %arg4: memref<8x64x24xbf16, #tpu.memory_space<vmem>>, %arg5: memref<64x64xbf16, #tpu.memory_space<vmem>>, %arg6: memref<1x64xf32, #tpu.memory_space<vmem>>, %arg7: memref<1x64xf32, #tpu.memory_space<vmem>>, %arg8: memref<1x64xf32, #tpu.memory_space<vmem>>, %arg9: memref<64x256xbf16, #tpu.memory_space<vmem>>, %arg10: memref<1x256xf32, #tpu.memory_space<vmem>>, %arg11: memref<256x64xbf16, #tpu.memory_space<vmem>>, %arg12: memref<1x64xf32, #tpu.memory_space<vmem>>, %arg13: memref<16x64xf32, #tpu.memory_space<vmem>>) attributes {dimension_semantics = [#tpu.dimension_semantics<parallel>], iteration_bounds = array<i64: 1>, scalar_prefetch = 0 : i64, scratch_operands = 0 : i64, tpu.core_type = #tpu.core_type<tc>, window_params = [{transform_indices = @transform_0, window_bounds = array<i64: 16, 64>}, {pipeline_mode = #tpu.pipeline_mode<synchronous>, transform_indices = @transform_1, window_bounds = array<i64: 1, 64>}, {pipeline_mode = #tpu.pipeline_mode<synchronous>, transform_indices = @transform_2, window_bounds = array<i64: 1, 64>}, {pipeline_mode = #tpu.pipeline_mode<synchronous>, transform_indices = @transform_3, window_bounds = array<i64: 8, 64, 24>}, {pipeline_mode = #tpu.pipeline_mode<synchronous>, transform_indices = @transform_4, window_bounds = array<i64: 64, 64>}, {pipeline_mode = #tpu.pipeline_mode<synchronous>, transform_indices = @transform_5, window_bounds = array<i64: 1, 64>}, {pipeline_mode = #tpu.pipeline_mode<synchronous>, transform_indices = @transform_6, window_bounds = array<i64: 1, 64>}, {pipeline_mode = #tpu.pipeline_mode<synchronous>, transform_indices = @transform_7, window_bounds = array<i64: 1, 64>}, {pipeline_mode = #tpu.pipeline_mode<synchronous>, transform_indices = @transform_8, window_bounds = array<i64: 64, 256>}, {pipeline_mode = #tpu.pipeline_mode<synchronous>, transform_indices = @transform_9, window_bounds = array<i64: 1, 256>}, {pipeline_mode = #tpu.pipeline_mode<synchronous>, transform_indices = @transform_10, window_bounds = array<i64: 256, 64>}, {pipeline_mode = #tpu.pipeline_mode<synchronous>, transform_indices = @transform_11, window_bounds = array<i64: 1, 64>}, {transform_indices = @transform_12, window_bounds = array<i64: 16, 64>}]} {
    %c0 = arith.constant 0 : index
    %c0_0 = arith.constant 0 : index
    %0 = vector.load %arg1[%c0, %c0_0] : memref<16x64xf32, #tpu.memory_space<vmem>>, vector<16x64xf32>
    %c0_1 = arith.constant 0 : index
    %c0_2 = arith.constant 0 : index
    %1 = vector.load %arg2[%c0_1, %c0_2] : memref<1x64xf32, #tpu.memory_space<vmem>>, vector<1x64xf32>
    %c0_3 = arith.constant 0 : index
    %c0_4 = arith.constant 0 : index
    %2 = vector.load %arg3[%c0_3, %c0_4] : memref<1x64xf32, #tpu.memory_space<vmem>>, vector<1x64xf32>
    %cst = arith.constant dense<0.000000e+00> : vector<16xf32>
    %3 = vector.multi_reduction <add>, %0, %cst [1] : vector<16x64xf32> to vector<16xf32>
    %4 = vector.shape_cast %3 : vector<16xf32> to vector<16x1xf32>
    %cst_5 = arith.constant 6.400000e+01 : f32
    %5 = vector.broadcast %cst_5 : f32 to vector<16x1xf32>
    %6 = arith.divf %4, %5 : vector<16x1xf32>
    %7 = vector.broadcast %6 : vector<16x1xf32> to vector<16x64xf32>
    %8 = arith.subf %0, %7 : vector<16x64xf32>
    %9 = arith.mulf %8, %8 : vector<16x64xf32>
    %cst_6 = arith.constant dense<0.000000e+00> : vector<16xf32>
    %10 = vector.multi_reduction <add>, %9, %cst_6 [1] : vector<16x64xf32> to vector<16xf32>
    %11 = vector.shape_cast %10 : vector<16xf32> to vector<16x1xf32>
    %cst_7 = arith.constant 6.400000e+01 : f32
    %12 = vector.broadcast %cst_7 : f32 to vector<16x1xf32>
    %13 = arith.divf %11, %12 : vector<16x1xf32>
    %14 = vector.broadcast %6 : vector<16x1xf32> to vector<16x64xf32>
    %15 = arith.subf %0, %14 : vector<16x64xf32>
    %cst_8 = arith.constant 9.99999974E-6 : f32
    %16 = vector.broadcast %cst_8 : f32 to vector<16x1xf32>
    %17 = arith.addf %13, %16 : vector<16x1xf32>
    %18 = math.rsqrt %17 : vector<16x1xf32>
    %19 = vector.broadcast %18 : vector<16x1xf32> to vector<16x64xf32>
    %20 = arith.mulf %15, %19 : vector<16x64xf32>
    %21 = vector.broadcast %1 : vector<1x64xf32> to vector<16x64xf32>
    %22 = arith.mulf %20, %21 : vector<16x64xf32>
    %23 = vector.broadcast %2 : vector<1x64xf32> to vector<16x64xf32>
    %24 = arith.addf %22, %23 : vector<16x64xf32>
    %25 = arith.truncf %24 : vector<16x64xf32> to vector<16x64xbf16>
    %26 = vector.shape_cast %25 : vector<16x64xbf16> to vector<1x16x64xbf16>
    %27 = vector.shape_cast %26 : vector<1x16x64xbf16> to vector<1x16x64xbf16>
    %28 = vector.broadcast %27 : vector<1x16x64xbf16> to vector<8x16x64xbf16>
    %c0_9 = arith.constant 0 : index
    %c0_10 = arith.constant 0 : index
    %c0_11 = arith.constant 0 : index
    %29 = vector.load %arg4[%c0_9, %c0_10, %c0_11] : memref<8x64x24xbf16, #tpu.memory_space<vmem>>, vector<8x64x24xbf16>
    "tpu.trace_start"() <{level = 10 : i32, message = "hmc,hcn->hmn"}> : () -> ()
    %cst_12 = arith.constant dense<0.000000e+00> : vector<8x16x24xf32>
    %30 = tpu.matmul %28, %29, %cst_12 {dimension_numbers = #tpu.dot_dimension_numbers<[2], [1], [1], [2], [0, 0, 0, 1, 1, 2], [0], [0]>} : vector<8x16x64xbf16>, vector<8x64x24xbf16>, vector<8x16x24xf32> -> vector<8x16x24xf32>
    "tpu.trace_stop"() : () -> ()
    %31 = vector.extract_strided_slice %30 {offsets = [0, 0, 0], sizes = [8, 16, 8], strides = [1, 1, 1]} : vector<8x16x24xf32> to vector<8x16x8xf32>
    %32 = vector.shape_cast %31 : vector<8x16x8xf32> to vector<16x8x8xf32>
    %33 = vector.extract_strided_slice %30 {offsets = [0, 0, 8], sizes = [8, 16, 8], strides = [1, 1, 1]} : vector<8x16x24xf32> to vector<8x16x8xf32>
    %34 = vector.shape_cast %33 : vector<8x16x8xf32> to vector<16x8x8xf32>
    %35 = vector.extract_strided_slice %30 {offsets = [0, 0, 16], sizes = [8, 16, 8], strides = [1, 1, 1]} : vector<8x16x24xf32> to vector<8x16x8xf32>
    %36 = vector.shape_cast %35 : vector<8x16x8xf32> to vector<16x8x8xf32>
    %37 = tpu.iota {dimensions = array<i32: 0>} : vector<8x8xi32>
    %38 = tpu.iota {dimensions = array<i32: 1>} : vector<8x8xi32>
    %39 = arith.cmpi sle, %38, %37 : vector<8x8xi32>
    %cst_13 = arith.constant 0.000000e+00 : f32
    %cst_14 = arith.constant -1.000000e+30 : f32
    %40 = vector.broadcast %cst_13 : f32 to vector<8x8xf32>
    %41 = vector.broadcast %cst_14 : f32 to vector<8x8xf32>
    %42 = arith.select %39, %40, %41 : vector<8x8xi1>, vector<8x8xf32>
    "tpu.trace_start"() <{level = 10 : i32, message = "bqd,bkd->bqk"}> : () -> ()
    %cst_15 = arith.constant dense<0.000000e+00> : vector<16x8x8xf32>
    %43 = tpu.matmul %32, %34, %cst_15 {dimension_numbers = #tpu.dot_dimension_numbers<[2], [2], [1], [1], [0, 0, 0, 1, 1, 1], [0], [0]>} : vector<16x8x8xf32>, vector<16x8x8xf32>, vector<16x8x8xf32> -> vector<16x8x8xf32>
    "tpu.trace_stop"() : () -> ()
    %44 = vector.shape_cast %42 : vector<8x8xf32> to vector<1x8x8xf32>
    %45 = vector.broadcast %44 : vector<1x8x8xf32> to vector<16x8x8xf32>
    %46 = arith.addf %43, %45 : vector<16x8x8xf32>
    %cst_16 = arith.constant dense<0xFF800000> : vector<16x8xf32>
    %47 = vector.multi_reduction <maximumf>, %46, %cst_16 [2] : vector<16x8x8xf32> to vector<16x8xf32>
    %48 = vector.shape_cast %47 : vector<16x8xf32> to vector<16x8x1xf32>
    %49 = vector.broadcast %48 : vector<16x8x1xf32> to vector<16x8x8xf32>
    %50 = arith.subf %46, %49 : vector<16x8x8xf32>
    %51 = math.exp %50 : vector<16x8x8xf32>
    %cst_17 = arith.constant dense<0.000000e+00> : vector<16x8xf32>
    %52 = vector.multi_reduction <add>, %51, %cst_17 [2] : vector<16x8x8xf32> to vector<16x8xf32>
    %53 = vector.shape_cast %52 : vector<16x8xf32> to vector<16x8x1xf32>
    %54 = tpu.reciprocal %53 {approx = true} : vector<16x8x1xf32> -> vector<16x8x1xf32>
    %55 = vector.broadcast %54 : vector<16x8x1xf32> to vector<16x8x8xf32>
    %56 = arith.mulf %51, %55 : vector<16x8x8xf32>
    "tpu.trace_start"() <{level = 10 : i32, message = "bqk,bkd->bqd"}> : () -> ()
    %cst_18 = arith.constant dense<0.000000e+00> : vector<16x8x8xf32>
    %57 = tpu.matmul %56, %36, %cst_18 {dimension_numbers = #tpu.dot_dimension_numbers<[2], [1], [1], [2], [0, 0, 0, 1, 1, 2], [0], [0]>} : vector<16x8x8xf32>, vector<16x8x8xf32>, vector<16x8x8xf32> -> vector<16x8x8xf32>
    "tpu.trace_stop"() : () -> ()
    %58 = vector.shape_cast %57 : vector<16x8x8xf32> to vector<8x16x8xf32>
    %59 = vector.extract_strided_slice %58 {offsets = [0, 0, 0], sizes = [1, 16, 8], strides = [1, 1, 1]} : vector<8x16x8xf32> to vector<1x16x8xf32>
    %60 = vector.shape_cast %59 : vector<1x16x8xf32> to vector<16x8xf32>
    %61 = vector.extract_strided_slice %58 {offsets = [1, 0, 0], sizes = [1, 16, 8], strides = [1, 1, 1]} : vector<8x16x8xf32> to vector<1x16x8xf32>
    %62 = vector.shape_cast %61 : vector<1x16x8xf32> to vector<16x8xf32>
    %63 = vector.extract_strided_slice %58 {offsets = [2, 0, 0], sizes = [1, 16, 8], strides = [1, 1, 1]} : vector<8x16x8xf32> to vector<1x16x8xf32>
    %64 = vector.shape_cast %63 : vector<1x16x8xf32> to vector<16x8xf32>
    %65 = vector.extract_strided_slice %58 {offsets = [3, 0, 0], sizes = [1, 16, 8], strides = [1, 1, 1]} : vector<8x16x8xf32> to vector<1x16x8xf32>
    %66 = vector.shape_cast %65 : vector<1x16x8xf32> to vector<16x8xf32>
    %67 = vector.extract_strided_slice %58 {offsets = [4, 0, 0], sizes = [1, 16, 8], strides = [1, 1, 1]} : vector<8x16x8xf32> to vector<1x16x8xf32>
    %68 = vector.shape_cast %67 : vector<1x16x8xf32> to vector<16x8xf32>
    %69 = vector.extract_strided_slice %58 {offsets = [5, 0, 0], sizes = [1, 16, 8], strides = [1, 1, 1]} : vector<8x16x8xf32> to vector<1x16x8xf32>
    %70 = vector.shape_cast %69 : vector<1x16x8xf32> to vector<16x8xf32>
    %71 = vector.extract_strided_slice %58 {offsets = [6, 0, 0], sizes = [1, 16, 8], strides = [1, 1, 1]} : vector<8x16x8xf32> to vector<1x16x8xf32>
    %72 = vector.shape_cast %71 : vector<1x16x8xf32> to vector<16x8xf32>
    %73 = vector.extract_strided_slice %58 {offsets = [7, 0, 0], sizes = [1, 16, 8], strides = [1, 1, 1]} : vector<8x16x8xf32> to vector<1x16x8xf32>
    %74 = vector.shape_cast %73 : vector<1x16x8xf32> to vector<16x8xf32>
    %75 = tpu.concatenate %60, %62, %64, %66, %68, %70, %72, %74 in 1 : vector<16x8xf32>, vector<16x8xf32>, vector<16x8xf32>, vector<16x8xf32>, vector<16x8xf32>, vector<16x8xf32>, vector<16x8xf32>, vector<16x8xf32> -> vector<16x64xf32>
    %76 = arith.truncf %75 : vector<16x64xf32> to vector<16x64xbf16>
    %c0_19 = arith.constant 0 : index
    %c0_20 = arith.constant 0 : index
    %77 = vector.load %arg5[%c0_19, %c0_20] : memref<64x64xbf16, #tpu.memory_space<vmem>>, vector<64x64xbf16>
    %cst_21 = arith.constant dense<0.000000e+00> : vector<16x64xf32>
    %78 = tpu.matmul %76, %77, %cst_21 {dimension_numbers = #tpu.dot_dimension_numbers<[1], [0], [0], [1], [0, 0, 1, 1], [], []>} : vector<16x64xbf16>, vector<64x64xbf16>, vector<16x64xf32> -> vector<16x64xf32>
    %c0_22 = arith.constant 0 : index
    %c0_23 = arith.constant 0 : index
    %79 = vector.load %arg6[%c0_22, %c0_23] : memref<1x64xf32, #tpu.memory_space<vmem>>, vector<1x64xf32>
    %80 = vector.broadcast %79 : vector<1x64xf32> to vector<16x64xf32>
    %81 = arith.addf %78, %80 : vector<16x64xf32>
    %82 = arith.addf %0, %81 : vector<16x64xf32>
    %c0_24 = arith.constant 0 : index
    %c0_25 = arith.constant 0 : index
    %83 = vector.load %arg7[%c0_24, %c0_25] : memref<1x64xf32, #tpu.memory_space<vmem>>, vector<1x64xf32>
    %c0_26 = arith.constant 0 : index
    %c0_27 = arith.constant 0 : index
    %84 = vector.load %arg8[%c0_26, %c0_27] : memref<1x64xf32, #tpu.memory_space<vmem>>, vector<1x64xf32>
    %cst_28 = arith.constant dense<0.000000e+00> : vector<16xf32>
    %85 = vector.multi_reduction <add>, %82, %cst_28 [1] : vector<16x64xf32> to vector<16xf32>
    %86 = vector.shape_cast %85 : vector<16xf32> to vector<16x1xf32>
    %cst_29 = arith.constant 6.400000e+01 : f32
    %87 = vector.broadcast %cst_29 : f32 to vector<16x1xf32>
    %88 = arith.divf %86, %87 : vector<16x1xf32>
    %89 = vector.broadcast %88 : vector<16x1xf32> to vector<16x64xf32>
    %90 = arith.subf %82, %89 : vector<16x64xf32>
    %91 = arith.mulf %90, %90 : vector<16x64xf32>
    %cst_30 = arith.constant dense<0.000000e+00> : vector<16xf32>
    %92 = vector.multi_reduction <add>, %91, %cst_30 [1] : vector<16x64xf32> to vector<16xf32>
    %93 = vector.shape_cast %92 : vector<16xf32> to vector<16x1xf32>
    %cst_31 = arith.constant 6.400000e+01 : f32
    %94 = vector.broadcast %cst_31 : f32 to vector<16x1xf32>
    %95 = arith.divf %93, %94 : vector<16x1xf32>
    %96 = vector.broadcast %88 : vector<16x1xf32> to vector<16x64xf32>
    %97 = arith.subf %82, %96 : vector<16x64xf32>
    %cst_32 = arith.constant 9.99999974E-6 : f32
    %98 = vector.broadcast %cst_32 : f32 to vector<16x1xf32>
    %99 = arith.addf %95, %98 : vector<16x1xf32>
    %100 = math.rsqrt %99 : vector<16x1xf32>
    %101 = vector.broadcast %100 : vector<16x1xf32> to vector<16x64xf32>
    %102 = arith.mulf %97, %101 : vector<16x64xf32>
    %103 = vector.broadcast %83 : vector<1x64xf32> to vector<16x64xf32>
    %104 = arith.mulf %102, %103 : vector<16x64xf32>
    %105 = vector.broadcast %84 : vector<1x64xf32> to vector<16x64xf32>
    %106 = arith.addf %104, %105 : vector<16x64xf32>
    %107 = arith.truncf %106 : vector<16x64xf32> to vector<16x64xbf16>
    %c0_33 = arith.constant 0 : index
    %c0_34 = arith.constant 0 : index
    %108 = vector.load %arg9[%c0_33, %c0_34] : memref<64x256xbf16, #tpu.memory_space<vmem>>, vector<64x256xbf16>
    %cst_35 = arith.constant dense<0.000000e+00> : vector<16x256xf32>
    %109 = tpu.matmul %107, %108, %cst_35 {dimension_numbers = #tpu.dot_dimension_numbers<[1], [0], [0], [1], [0, 0, 1, 1], [], []>} : vector<16x64xbf16>, vector<64x256xbf16>, vector<16x256xf32> -> vector<16x256xf32>
    %c0_36 = arith.constant 0 : index
    %c0_37 = arith.constant 0 : index
    %110 = vector.load %arg10[%c0_36, %c0_37] : memref<1x256xf32, #tpu.memory_space<vmem>>, vector<1x256xf32>
    %111 = vector.broadcast %110 : vector<1x256xf32> to vector<16x256xf32>
    %112 = arith.addf %109, %111 : vector<16x256xf32>
    %cst_38 = arith.constant 0.000000e+00 : f32
    %113 = vector.broadcast %cst_38 : f32 to vector<16x256xf32>
    %114 = arith.maximumf %112, %113 : vector<16x256xf32>
    %115 = arith.truncf %114 : vector<16x256xf32> to vector<16x256xbf16>
    %c0_39 = arith.constant 0 : index
    %c0_40 = arith.constant 0 : index
    %116 = vector.load %arg11[%c0_39, %c0_40] : memref<256x64xbf16, #tpu.memory_space<vmem>>, vector<256x64xbf16>
    %cst_41 = arith.constant dense<0.000000e+00> : vector<16x64xf32>
    %117 = tpu.matmul %115, %116, %cst_41 {dimension_numbers = #tpu.dot_dimension_numbers<[1], [0], [0], [1], [0, 0, 1, 1], [], []>} : vector<16x256xbf16>, vector<256x64xbf16>, vector<16x64xf32> -> vector<16x64xf32>
    %c0_42 = arith.constant 0 : index
    %c0_43 = arith.constant 0 : index
    %118 = vector.load %arg12[%c0_42, %c0_43] : memref<1x64xf32, #tpu.memory_space<vmem>>, vector<1x64xf32>
    %119 = vector.broadcast %118 : vector<1x64xf32> to vector<16x64xf32>
    %120 = arith.addf %117, %119 : vector<16x64xf32>
    %121 = arith.addf %82, %120 : vector<16x64xf32>
    %c0_44 = arith.constant 0 : index
    %c0_45 = arith.constant 0 : index
    %122 = vector.load %arg13[%c0_44, %c0_45] : memref<16x64xf32, #tpu.memory_space<vmem>>, vector<16x64xf32>
    tpu.vector_store %arg13[%c0_44, %c0_45], %121 {strides = array<i32>} : memref<16x64xf32, #tpu.memory_space<vmem>>, vector<16x64xf32>,
    return
  }
  func.func @transform_0(%arg0: i32) -> (i32, i32) {
    %c0_i32 = arith.constant 0 : i32
    %c0_i32_0 = arith.constant 0 : i32
    return %arg0, %c0_i32 : i32, i32
  }
  func.func @transform_1(%arg0: i32) -> (i32, i32) {
    %c0_i32 = arith.constant 0 : i32
    %c0_i32_0 = arith.constant 0 : i32
    %c0_i32_1 = arith.constant 0 : i32
    return %c0_i32, %c0_i32_0 : i32, i32
  }
  func.func @transform_2(%arg0: i32) -> (i32, i32) {
    %c0_i32 = arith.constant 0 : i32
    %c0_i32_0 = arith.constant 0 : i32
    %c0_i32_1 = arith.constant 0 : i32
    return %c0_i32, %c0_i32_0 : i32, i32
  }
  func.func @transform_3(%arg0: i32) -> (i32, i32, i32) {
    %c0_i32 = arith.constant 0 : i32
    %c0_i32_0 = arith.constant 0 : i32
    %c0_i32_1 = arith.constant 0 : i32
    %c0_i32_2 = arith.constant 0 : i32
    return %c0_i32, %c0_i32_0, %c0_i32_1 : i32, i32, i32
  }
  func.func @transform_4(%arg0: i32) -> (i32, i32) {
    %c0_i32 = arith.constant 0 : i32
    %c0_i32_0 = arith.constant 0 : i32
    %c0_i32_1 = arith.constant 0 : i32
    return %c0_i32, %c0_i32_0 : i32, i32
  }
  func.func @transform_5(%arg0: i32) -> (i32, i32) {
    %c0_i32 = arith.constant 0 : i32
    %c0_i32_0 = arith.constant 0 : i32
    %c0_i32_1 = arith.constant 0 : i32
    return %c0_i32, %c0_i32_0 : i32, i32
  }
  func.func @transform_6(%arg0: i32) -> (i32, i32) {
    %c0_i32 = arith.constant 0 : i32
    %c0_i32_0 = arith.constant 0 : i32
    %c0_i32_1 = arith.constant 0 : i32
    return %c0_i32, %c0_i32_0 : i32, i32
  }
  func.func @transform_7(%arg0: i32) -> (i32, i32) {
    %c0_i32 = arith.constant 0 : i32
    %c0_i32_0 = arith.constant 0 : i32
    %c0_i32_1 = arith.constant 0 : i32
    return %c0_i32, %c0_i32_0 : i32, i32
  }
  func.func @transform_8(%arg0: i32) -> (i32, i32) {
    %c0_i32 = arith.constant 0 : i32
    %c0_i32_0 = arith.constant 0 : i32
    %c0_i32_1 = arith.constant 0 : i32
    return %c0_i32, %c0_i32_0 : i32, i32
  }
  func.func @transform_9(%arg0: i32) -> (i32, i32) {
    %c0_i32 = arith.constant 0 : i32
    %c0_i32_0 = arith.constant 0 : i32
    %c0_i32_1 = arith.constant 0 : i32
    return %c0_i32, %c0_i32_0 : i32, i32
  }
  func.func @transform_10(%arg0: i32) -> (i32, i32) {
    %c0_i32 = arith.constant 0 : i32
    %c0_i32_0 = arith.constant 0 : i32
    %c0_i32_1 = arith.constant 0 : i32
    return %c0_i32, %c0_i32_0 : i32, i32
  }
  func.func @transform_11(%arg0: i32) -> (i32, i32) {
    %c0_i32 = arith.constant 0 : i32
    %c0_i32_0 = arith.constant 0 : i32
    %c0_i32_1 = arith.constant 0 : i32
    return %c0_i32, %c0_i32_0 : i32, i32
  }
  func.func @transform_12(%arg0: i32) -> (i32, i32) {
    %c0_i32 = arith.constant 0 : i32
    %c0_i32_0 = arith.constant 0 : i32
    return %arg0, %c0_i32 : i32, i32
  }
}

</mosaic_0001>

<bundles_post_ra>
// kernel: transformer_block.1
= control target key start
LH: loop header
LB: loop body
LE: loop exit
PB: predicated region body
PF: predicated region fallthrough
CT: control target
= control target key end

     0   :  { %vm47_vm0 = vcmask 523264   ;;  %s3189_s0 = inlined_call_operand.vmem [shape: f32[16,64], index: 0, kind: input, shape index: {}]   ;;  %s3190_s1 = inlined_call_operand.vmem [shape: f32[1,64], index: 1, kind: input, shape index: {}]   ;;  %s3191_s2 = inlined_call_operand.vmem [shape: f32[1,64], index: 2, kind: input, shape index: {}]   ;;  %s3192_s3 = inlined_call_operand.vmem [shape: bf16[8,64,24], index: 3, kind: input, shape index: {}]   ;;  %s3193_s4 = inlined_call_operand.vmem [shape: bf16[64,64], index: 4, kind: input, shape index: {}]   ;;  %s3194_s5 = inlined_call_operand.vmem [shape: f32[1,64], index: 5, kind: input, shape index: {}]   ;;  %s3195_s6 = inlined_call_operand.vmem [shape: f32[1,64], index: 6, kind: input, shape index: {}]   ;;  %s3196_s7 = inlined_call_operand.vmem [shape: f32[1,64], index: 7, kind: input, shape index: {}]   ;;  %s3197_s8 = inlined_call_operand.vmem [shape: bf16[64,256], index: 8, kind: input, shape index: {}]   ;;  %s3198_s9 = inlined_call_operand.vmem [shape: f32[1,256], index: 9, kind: input, shape index: {}]   ;;  %s3199_s10 = inlined_call_operand.vmem [shape: bf16[256,64], index: 10, kind: input, shape index: {}]   ;;  %s3200_s11 = inlined_call_operand.vmem [shape: f32[1,64], index: 11, kind: input, shape index: {}]   ;;  %s3201_s12 = inlined_call_operand.hbm [shape: f32[16,64], index: 12, kind: output, shape index: {}]  }
   0x1   :  { %v43_v0 = vld [vmem:[%s3189_s0] sm:$0xff] }
   0x2   :  { %v48_v1 = vsel %vm47_vm0, %v43_v0, 0.0 }
   0x3   :  { %49 = vadd.xlane.f32.xlu0 %v48_v1 }
   0x4   :  { %17 = vsyncpa [#allocation3], 0  ;;  %v44_v2 = vld [vmem:[%s3189_s0 + $0x8] sm:$0xff]  ;;  %v2535_v4 = vmov 64.0   ;;  %v2282_v21 = vld [vmem:[%s3192_s3 + $0x18] sm:$0xff]  ;;  %s2536_s19 = smov 120  }
   0x5   :  { %v51_v3 = vsel %vm47_vm0, %v44_v2, 0.0  ;;  %2433 = vrcp.f32 %v2535_v4  ;;  %v2290_v22 = vld [vmem:[%s3192_s3 + $0x58] sm:$0xff]  ;;  %211 = vmatpush.bf16.msra.mxu1 %v2282_v21  ;;  %v2281_v25 = vld [vmem:[%s3192_s3 + $0x10] sm:$0xff]  ;;  %v2280_v31 = vld [vmem:[%s3192_s3 + $0x8] sm:$0xff]  ;;  %vm496_vm8 = vcmask 64512   ;;  %s2539_s20 = smov 16  }
   0x6   :  { %v2294_v23 = vld [vmem:[%s3192_s3 + $0x78] sm:$0xff]  ;;  %287 = vmatpush.bf16.msra.mxu2 %v2290_v22  ;;  %v2289_v26 = vld [vmem:[%s3192_s3 + $0x50] sm:$0xff]  ;;  %v2288_v32 = vld [vmem:[%s3192_s3 + $0x48] sm:$0xff]  ;;  %s2540_s21 = smov 8   ;;  %s2541_s22 = smov 32   ;;  %vm1576_vm10 = vcmask 130048  }
   0x7   :  { %v2298_v24 = vld [vmem:[%s3192_s3 + $0x98] sm:$0xff]  ;;  %325 = vmatpush.bf16.msra.mxu3 %v2294_v23  ;;  %v2293_v27 = vld [vmem:[%s3192_s3 + $0x70] sm:$0xff]  ;;  %v2292_v33 = vld [vmem:[%s3192_s3 + $0x68] sm:$0xff]  ;;  %s2542_s23 = smov 24   ;;  %s2543_s24 = smov 40   ;;  %vm1579_vm11 = vcmask 195584  }
   0x8   :  { %363 = vmatpush.bf16.msra.mxu0 %v2298_v24  ;;  %v2297_v28 = vld [vmem:[%s3192_s3 + $0x90] sm:$0xff]  ;;  %v2296_v35 = vld [vmem:[%s3192_s3 + $0x88] sm:$0xff]  ;;  %v2279_v36 = vld [vmem:[%s3192_s3] sm:$0xff]  ;;  %s2544_s25 = smov 56   ;;  %s2545_s26 = smov 48   ;;  %vm1582_vm12 = vcmask 261120  }
   0x9   :  { %212 = vmatpush.bf16.msra.mxu1 %v2281_v25  ;;  %v2287_v37 = vld [vmem:[%s3192_s3 + $0x40] sm:$0xff]  ;;  %v2286_v44 = vld [vmem:[%s3192_s3 + $0x38] sm:$0xff]  ;;  %v2285_v48 = vld [vmem:[%s3192_s3 + $0x30] sm:$0xff]  ;;  %vm1585_vm13 = vcmask 326656   ;;  %vm1588_vm14 = vcmask 392192   ;;  %vm1591_vm15 = vcmask 457728  }
   0xa   :  { %288 = vmatpush.bf16.msra.mxu2 %v2289_v26  ;;  %v2291_v38 = vld [vmem:[%s3192_s3 + $0x60] sm:$0xff]  ;;  %v2306_v45 = vld [vmem:[%s3192_s3 + $0xd8] sm:$0xff]  ;;  %v2305_v49 = vld [vmem:[%s3192_s3 + $0xd0] sm:$0xff] }
   0xb   :  { %52 = vadd.xlane.f32.xlu0 %v51_v3  ;;  %v2434_v5 = vpop.eup %2433  ;;  %326 = vmatpush.bf16.msra.mxu3 %v2293_v27  ;;  %v2295_v39 = vld [vmem:[%s3192_s3 + $0x80] sm:$0xff]  ;;  %v2310_v46 = vld [vmem:[%s3192_s3 + $0xf8] sm:$0xff]  ;;  %v2309_v51 = vld [vmem:[%s3192_s3 + $0xf0] sm:$0xff] }
   0xc   :  { %v55_v6 = vmul.f32 64.0, %v2434_v5  ;;  %vm59_vm1 = vweird.f32 %v2434_v5  ;;  %364 = vmatpush.bf16.msra.mxu0 %v2297_v28  ;;  %v2284_v53 = vld [vmem:[%s3192_s3 + $0x28] sm:$0xff]  ;;  %v2283_v60 = vld [vmem:[%s3192_s3 + $0x20] sm:$0xff] }
   0xd   :  { %213 = vmatpush.bf16.msra.mxu1 %v2280_v31  ;;  %v2304_v54 = vld [vmem:[%s3192_s3 + $0xc8] sm:$0xff]  ;;  %v2303_v61 = vld [vmem:[%s3192_s3 + $0xc0] sm:$0xff] }
   0xe   :  { %v56_v7 = vsub.f32 1.0, %v55_v6  ;;  %289 = vmatpush.bf16.msra.mxu2 %v2288_v32  ;;  %v2308_v56 = vld [vmem:[%s3192_s3 + $0xe8] sm:$0xff]  ;;  %v2427_v1 = vld [vmem:[%s3190_s1] ss:$0 sm:$0xff] }
   0xf   :  { %327 = vmatpush.bf16.msra.mxu3 %v2292_v33  ;;  %v2300_v21 = vld [vmem:[%s3192_s3 + $0xa8] sm:$0xff]  ;;  %v2299_v22 = vld [vmem:[%s3192_s3 + $0xa0] sm:$0xff] }
  0x10   :  { %v57_v8 = vmul.f32 %v2434_v5, %v56_v7  ;;  %365 = vmatpush.bf16.msra.mxu0 %v2296_v35 }
  0x11   :  { %214 = vmatpush.bf16.msra.mxu1 %v2279_v36 }
  0x12   :  { %v58_v9 = vadd.f32 %v2434_v5, %v57_v8  ;;  %290 = vmatpush.bf16.msra.mxu2 %v2287_v37 }
  0x13   :  { %328 = vmatpush.bf16.msra.mxu3 %v2291_v38 }
  0x14   :  { %v2621_v10 = vsel %vm59_vm1, %v2434_v5, %v58_v9  ;;  %366 = vmatpush.bf16.msra.mxu0 %v2295_v39  ;;  %v2428_v5 = vld [vmem:[%s3191_s2] ss:$0 sm:$0xff] }
  0x15   :  { %249 = vmatpush.bf16.msrb.mxu1 %v2286_v44 }
  0x16   :  { %439 = vmatpush.bf16.msrb.mxu2 %v2306_v45 }
  0x17   :  { %477 = vmatpush.bf16.msrb.mxu3 %v2310_v46 }
  0x19   :  { %250 = vmatpush.bf16.msrb.mxu1 %v2285_v48 }
  0x1a   :  { %440 = vmatpush.bf16.msrb.mxu2 %v2305_v49 }
  0x1b   :  { %478 = vmatpush.bf16.msrb.mxu3 %v2309_v51 }
  0x1d   :  { %251 = vmatpush.bf16.msrb.mxu1 %v2284_v53 }
  0x1e   :  { %441 = vmatpush.bf16.msrb.mxu2 %v2304_v54 }
  0x1f   :  { %479 = vmatpush.bf16.msrb.mxu3 %v2308_v56 }
  0x21   :  { %252 = vmatpush.bf16.msrb.mxu1 %v2283_v60 }
  0x22   :  { %442 = vmatpush.bf16.msrb.mxu2 %v2303_v61 }
  0x76   :  { %v50_v11 = vpop.xlane.xlu0 %49 }
  0x77   :  { %v61_v12 = vmul.f32 %v2621_v10, %v50_v11 }
  0x79   :  { %v2624_v13 = vsub.f32 %v43_v0, %v61_v12  ;;  %v2307_v0 = vld [vmem:[%s3192_s3 + $0xe0] sm:$0xff] }
  0x7a   :  { %480 = vmatpush.bf16.msrb.mxu3 %v2307_v0 }
  0x7b   :  { %v65_v14 = vmul.f32 %v2624_v13, %v2624_v13 }
  0x7d   :  { %v67_v15 = vsel %vm47_vm0, %v65_v14, 0.0 }
  0x7e   :  { %68 = vadd.xlane.f32.xlu1 %v67_v15  ;;  %v53_v16 = vpop.xlane.xlu0 %52 }
  0x7f   :  { %v62_v17 = vmul.f32 %v2621_v10, %v53_v16 }
  0x81   :  { %v2630_v18 = vsub.f32 %v44_v2, %v62_v17 }
  0x83   :  { %v66_v19 = vmul.f32 %v2630_v18, %v2630_v18 }
  0x85   :  { %v70_v20 = vsel %vm47_vm0, %v66_v19, 0.0 }
  0x86   :  { %71 = vadd.xlane.f32.xlu1 %v70_v20  ;;  %v2302_v20 = vld [vmem:[%s3192_s3 + $0xb8] sm:$0xff] }
  0xf1   :  { %v69_v29 = vpop.xlane.xlu1 %68 }
  0xf2   :  { %v73_v30 = vmul.f32 %v69_v29, %v2621_v10 }
  0xf4   :  { %v75_v34 = vadd.f32 1e-05, %v73_v30 }
  0xf6   :  { %2435 = vrsqrt.f32 %v75_v34  ;;  %vm83_vm3 = vweird.f32 %v75_v34 }
  0xf9   :  { %v72_v40 = vpop.xlane.xlu1 %71 }
  0xfa   :  { %v74_v41 = vmul.f32 %v72_v40, %v2621_v10 }
  0xfc   :  { %v2436_v42 = vpop.eup %2435  ;;  %v76_v43 = vadd.f32 1e-05, %v74_v41 }
  0xfd   :  { %v78_v47 = vmul.f32 %v2436_v42, %v75_v34  ;;  %vm84_vm2 = vweird.f32 %v2436_v42 }
  0xfe   :  { %2437 = vrsqrt.f32 %v76_v43  ;;  %vm85_vm4 = vmor %vm83_vm3, %vm84_vm2  ;;  %vm93_vm6 = vweird.f32 %v76_v43 }
  0xff   :  { %v79_v50 = vmul.f32 %v2436_v42, %v78_v47 }
 0x101   :  { %v80_v52 = vmul.f32 0.5, %v79_v50 }
 0x103   :  { %v81_v55 = vsub.f32 1.5, %v80_v52 }
 0x104   :  { %v2438_v57 = vpop.eup %2437 }
 0x105   :  { %v82_v58 = vmul.f32 %v2436_v42, %v81_v55  ;;  %v88_v59 = vmul.f32 %v2438_v57, %v76_v43  ;;  %vm94_vm5 = vweird.f32 %v2438_v57 }
 0x106   :  { %vm95_vm7 = vmor %vm93_vm6, %vm94_vm5 }
 0x107   :  { %v86_v62 = vsel %vm85_vm4, %v2436_v42, %v82_v58  ;;  %v89_v63 = vmul.f32 %v2438_v57, %v88_v59 }
 0x108   :  { %v97_v2 = vmul.f32 %v86_v62, %v2624_v13 }
 0x109   :  { %v90_v3 = vmul.f32 0.5, %v89_v63 }
 0x10a   :  { %v102_v6 = vmul.f32 %v2427_v1, %v97_v2 }
 0x10b   :  { %v91_v4 = vsub.f32 1.5, %v90_v3 }
 0x10c   :  { %v107_v9 = vadd.f32 %v2428_v5, %v102_v6 }
 0x10d   :  { %v92_v7 = vmul.f32 %v2438_v57, %v91_v4 }
 0x10e   :  { %v109_v13 = vpack.c.bf16 %v107_v9, %v107_v9 }
 0x10f   :  { %v96_v8 = vsel %vm95_vm7, %v2438_v57, %v92_v7 }
 0x110   :  { %v98_v11 = vmul.f32 %v96_v8, %v2630_v18  ;;  %v177_v16 = vunpack.c.l.b16 %v109_v13  ;;  %v2301_v18 = vld [vmem:[%s3192_s3 + $0xb0] sm:$0xff]  ;;  %s2537_s3 = smov 112   ;;  %v487_v8 = vlaneseq }
 0x112   :  { %v103_v12 = vmul.f32 %v2427_v1, %v98_v11  ;;  %v488_v9 = vshrl.u32 %v487_v8, 7  ;;  %v490_v11 = vand.u32 127, %v487_v8 }
 0x114   :  { %v108_v14 = vadd.f32 %v2428_v5, %v103_v12  ;;  %vm491_vm9 = vcmp.le.s32.totalorder %v490_v11, %v488_v9  ;;  %v2538_v12 = vmov -1e+30  }
 0x115   :  { %v492_v13 = vsel %vm491_vm9, 0.0, %v2538_v12 }
 0x116   :  { %v110_v15 = vpack.c.bf16 %v108_v14, %v108_v14 }
 0x118   :  { %v178_v17 = vunpack.c.l.b16 %v110_v15 }
 0x11a   :  { %v179_v19 = vpack.c.b16 %v178_v17, %v177_v16 }
 0x11c   :  { %1996 = vmatmul.msk.bf16.vlgmr.msra.gmra.mxu1 %vm47_vm0, %v179_v19  ;;  %2030 = vmatmul.msk.bf16.vlgmr.msra.gmra.mxu2 %vm47_vm0, %v179_v19 }
 0x11d   :  { %2047 = vmatmul.msk.bf16.vlgmr.msra.gmra.mxu3 %vm47_vm0, %v179_v19  ;;  %2064 = vmatmul.msk.bf16.vlgmr.msra.gmra.mxu0 %vm47_vm0, %v179_v19 }
 0x11e   :  { %401 = vmatpush.bf16.msra.mxu1 %v2302_v20 }
 0x122   :  { %402 = vmatpush.bf16.msra.mxu1 %v2301_v18 }
 0x126   :  { %403 = vmatpush.bf16.msra.mxu1 %v2300_v21 }
 0x12a   :  { %404 = vmatpush.bf16.msra.mxu1 %v2299_v22 }
 0x12c   :  { %2013 = vmatmul.msk.bf16.vlgmr.msrb.gmra.mxu1 %vm47_vm0, %v179_v19  ;;  %2098 = vmatmul.msk.bf16.vlgmr.msrb.gmra.mxu2 %vm47_vm0, %v179_v19 }
 0x12d   :  { %2115 = vmatmul.msk.bf16.vlgmr.msrb.gmra.mxu3 %vm47_vm0, %v179_v19 }
 0x13c   :  { %2081 = vmatmul.msk.bf16.vlgmr.msra.gmra.mxu1 %vm47_vm0, %v179_v19 }
 0x199   :  { %v216_v23 = vpop.f32.mrf.mxu1 }
 0x19a   :  { %494 = vrot.lane.b32.xlu2 %v216_v23, %s2536_s19  ;;  %v2755_v30 = vpop.f32.mrf.mxu0 }
 0x19f   :  { %v292_v24 = vpop.f32.mrf.mxu2 }
 0x1a0   :  { %v330_v25 = vpop.f32.mrf.mxu3 }
 0x1a1   :  { %657 = vrot.lane.b32.xlu1 %v330_v25, %s2536_s19  ;;  %v218_v26 = vpop.f32.mrf.mxu1 }
 0x1a2   :  { %v2357_v35 = vpack.i.bf16 %v218_v26, %v216_v23  ;;  %v2778_v39 = vpop.f32.mrf.mxu0 }
 0x1a7   :  { %v294_v27 = vpop.f32.mrf.mxu2 }
 0x1a8   :  { %v2757_v31 = vpop.f32.mrf.mxu3  ;;  %v2367_v37 = vpack.i.bf16 %v294_v27, %v292_v24 }
 0x1a9   :  { %630 = vrot.lane.b32.xlu1 %v294_v27, %s2536_s19  ;;  %v254_v28 = vpop.f32.mrf.mxu1  ;;  %v2362_v43 = vpack.i.bf16 %v2757_v31, %v330_v25 }
 0x1aa   :  { %549 = vrot.lane.b32.xlu2 %v254_v28, %s2536_s19 }
 0x1af   :  { %v2753_v29 = vpop.f32.mrf.mxu2 }
 0x1b0   :  { %v2772_v38 = vpop.f32.mrf.mxu3 }
 0x1b1   :  { %711 = vrot.lane.b32.xlu1 %v2755_v30, %s2536_s19  ;;  %v256_v32 = vpop.f32.mrf.mxu1 }
 0x1b2   :  { %684 = vrot.lane.b32.xlu2 %v2757_v31, %s2536_s19  ;;  %576 = vrot.lane.b32.xlu0 %v256_v32, %s2536_s19  ;;  %v2352_v42 = vpack.i.bf16 %v256_v32, %v254_v28 }
 0x1b7   :  { %v2764_v33 = vpop.f32.mrf.mxu2 }
 0x1b8   :  { %v2780_v40 = vpop.f32.mrf.mxu3 }
 0x1b9   :  { %846 = vrot.lane.b32.xlu1 %v2764_v33, %s2536_s19  ;;  %v406_v34 = vpop.f32.mrf.mxu1 }
 0x1ba   :  { %522 = vrot.lane.b32.xlu2 %v218_v26, %s2536_s19 }
 0x1c1   :  { %2358 = vrot.lane.b32.xlu1 %v2357_v35, %s2537_s3  ;;  %v408_v36 = vpop.f32.mrf.mxu1 }
 0x1c2   :  { %603 = vrot.lane.b32.xlu2 %v292_v24, %s2536_s19  ;;  %792 = vrot.lane.b32.xlu0 %v408_v36, %s2536_s19  ;;  %v2372_v41 = vpack.i.bf16 %v408_v36, %v406_v34 }
 0x1c9   :  { %2368 = vrot.lane.b32.xlu1 %v2367_v37, %s2537_s3 }
 0x1ca   :  { %765 = vrot.lane.b32.xlu2 %v406_v34, %s2536_s19  ;;  %873 = vrot.lane.b32.xlu0 %v2772_v38, %s2536_s19 }
 0x1d2   :  { %900 = vrot.lane.b32.xlu2 %v2780_v40, %s2536_s19  ;;  %738 = vrot.lane.b32.xlu0 %v2778_v39, %s2536_s19 }
 0x1da   :  { %819 = vrot.lane.b32.xlu2 %v2753_v29, %s2536_s19  ;;  %2373 = vrot.lane.b32.xlu0 %v2372_v41, %s2537_s3  ;;  %s1968_s19 = sshll.u32 %s3201_s12, 4  ;;  %s1969_s19 = int_to_ptr.hbm [resolvable:$true] %s1968_s19 }
 0x1e2   :  { %2353 = vrot.lane.b32.xlu2 %v2352_v42, %s2537_s3 }
 0x1ea   :  { %2363 = vrot.lane.b32.xlu2 %v2362_v43, %s2537_s3 }
 0x1f4   :  { %v495_v44 = vpop.permute.xlu2 %494 }
 0x1f5   :  { %2116 = vmatpush.xpose.msk.msra.mxu2 %vm496_vm8, %v495_v44 }
 0x1f8   :  { %2117 = vmatmul.msk.f32.vlgmr.msra.gmra.mxu2 %vm496_vm8, %v216_v23 }
 0x204   :  { %v550_v45 = vpop.permute.xlu2 %549 }
 0x205   :  { %2120 = vmatpush.xpose.msk.msrb.mxu2 %vm496_vm8, %v550_v45 }
 0x208   :  { %2121 = vmatmul.msk.f32.vlgmr.msrb.gmra.mxu2 %vm496_vm8, %v254_v28 }
 0x20c   :  { %v685_v46 = vpop.permute.xlu2 %684 }
 0x213   :  { %v658_v47 = vpop.permute.xlu1 %657 }
 0x214   :  { %2128 = vmatpush.xpose.msk.msra.mxu2 %vm496_vm8, %v658_v47  ;;  %v523_v48 = vpop.permute.xlu2 %522 }
 0x215   :  { %2118 = vmatpush.xpose.msk.msrb.mxu1 %vm496_vm8, %v523_v48 }
 0x217   :  { %2129 = vmatmul.msk.f32.vlgmr.msra.gmra.mxu2 %vm496_vm8, %v330_v25 }
 0x218   :  { %2119 = vmatmul.msk.f32.vlgmr.msrb.gmra.mxu1 %vm496_vm8, %v218_v26 }
 0x21b   :  { %v631_v49 = vpop.permute.xlu1 %630 }
 0x21c   :  { %2126 = vmatpush.xpose.msk.msra.mxu1 %vm496_vm8, %v631_v49  ;;  %v604_v50 = vpop.permute.xlu2 %603 }
 0x21d   :  { %2124 = vmatpush.xpose.msk.msrb.mxu0 %vm496_vm8, %v604_v50 }
 0x220   :  { %2125 = vmatmul.msk.f32.vlgmr.msrb.gmra.mxu0 %vm496_vm8, %v292_v24  ;;  %2127 = vmatmul.msk.f32.vlgmr.msra.gmra.mxu1 %vm496_vm8, %v294_v27 }
 0x223   :  { %v712_v51 = vpop.permute.xlu1 %711 }
 0x224   :  { %2132 = vmatpush.xpose.msk.msra.mxu0 %vm496_vm8, %v712_v51  ;;  %v577_v52 = vpop.permute.xlu0 %576  ;;  %v766_v53 = vpop.permute.xlu2 %765 }
 0x225   :  { %2122 = vmatpush.xpose.msk.msra.mxu3 %vm496_vm8, %v577_v52  ;;  %2136 = vmatpush.xpose.msk.msrb.mxu2 %vm496_vm8, %v766_v53 }
 0x228   :  { %2123 = vmatmul.msk.f32.vlgmr.msra.gmra.mxu3 %vm496_vm8, %v256_v32  ;;  %2133 = vmatmul.msk.f32.vlgmr.msra.gmra.mxu0 %vm496_vm8, %v2755_v30 }
 0x229   :  { %2130 = vmatpush.xpose.msk.msrb.mxu3 %vm496_vm8, %v685_v46  ;;  %2137 = vmatmul.msk.f32.vlgmr.msrb.gmra.mxu2 %vm496_vm8, %v406_v34 }
 0x22b   :  { %v847_v54 = vpop.permute.xlu1 %846 }
 0x22c   :  { %v901_v55 = vpop.permute.xlu2 %900 }
 0x230   :  { %2131 = vmatmul.msk.f32.vlgmr.msrb.gmra.mxu3 %vm496_vm8, %v2757_v31 }
 0x233   :  { %v2359_v56 = vpop.permute.xlu1 %2358 }
 0x234   :  { %v2360_v57 = vunpack.i.l.bf16 %v2359_v56  ;;  %v820_v58 = vpop.permute.xlu2 %819  ;;  %v793_v59 = vpop.permute.xlu0 %792  ;;  %v2361_v6 = vunpack.i.h.bf16 %v2359_v56 }
 0x235   :  { %2138 = vmatpush.xpose.msk.msra.mxu3 %vm496_vm8, %v793_v59  ;;  %2140 = vmatpush.xpose.msk.msrb.mxu0 %vm496_vm8, %v820_v58 }
 0x238   :  { %2139 = vmatmul.msk.f32.vlgmr.msra.gmra.mxu3 %vm496_vm8, %v408_v36  ;;  %2141 = vmatmul.msk.f32.vlgmr.msrb.gmra.mxu0 %vm496_vm8, %v2753_v29 }
 0x239   :  { %2146 = vmatpush.xpose.msk.msrb.mxu3 %vm496_vm8, %v901_v55  ;;  %1123 = vmatpush.msra.mxu0 %v2360_v57 }
 0x23b   :  { %v2369_v60 = vpop.permute.xlu1 %2368 }
 0x23c   :  { %v2370_v61 = vunpack.i.l.bf16 %v2369_v60  ;;  %v2354_v62 = vpop.permute.xlu2 %2353  ;;  %v874_v63 = vpop.permute.xlu0 %873  ;;  %v2371_v7 = vunpack.i.h.bf16 %v2369_v60 }
 0x23d   :  { %v2356_v0 = vunpack.i.h.bf16 %v2354_v62  ;;  %v2355_v1 = vunpack.i.l.bf16 %v2354_v62  ;;  %2144 = vmatpush.xpose.msk.msra.mxu2 %vm496_vm8, %v874_v63 }
 0x23e   :  { %1227 = vmatpush.msrb.mxu0 %v2370_v61 }
 0x23f   :  { %1201 = vmatpush.msra.mxu3 %v2356_v0 }
 0x240   :  { %2145 = vmatmul.msk.f32.vlgmr.msra.gmra.mxu2 %vm496_vm8, %v2772_v38  ;;  %2147 = vmatmul.msk.f32.vlgmr.msrb.gmra.mxu3 %vm496_vm8, %v2780_v40 }
 0x241   :  { %1175 = vmatpush.msrb.mxu2 %v2355_v1 }
 0x244   :  { %v2364_v2 = vpop.permute.xlu2 %2363  ;;  %v739_v3 = vpop.permute.xlu0 %738 }
 0x245   :  { %v2366_v4 = vunpack.i.h.bf16 %v2364_v2  ;;  %v2365_v5 = vunpack.i.l.bf16 %v2364_v2  ;;  %2134 = vmatpush.xpose.msk.msrb.mxu1 %vm496_vm8, %v739_v3 }
 0x247   :  { %1279 = vmatpush.msra.mxu2 %v2365_v5  ;;  %1305 = vmatpush.msrb.mxu3 %v2366_v4 }
 0x248   :  { %2135 = vmatmul.msk.f32.vlgmr.msrb.gmra.mxu1 %vm496_vm8, %v2778_v39 }
 0x249   :  { %2142 = vmatpush.xpose.msk.msra.mxu1 %vm496_vm8, %v847_v54 }
 0x24c   :  { %v2900_v9 = vpop.permute.xlu0 %2373 }
 0x24d   :  { %1149 = vmatpush.msrb.mxu1 %v2361_v6 }
 0x250   :  { %2143 = vmatmul.msk.f32.vlgmr.msra.gmra.mxu1 %vm496_vm8, %v2764_v33 }
 0x251   :  { %1253 = vmatpush.msra.mxu1 %v2371_v7 }
 0x27b   :  { %v518_v14 = vpop.f32.mrf.mxu2 }
 0x27c   :  { %v2831_v15 = vadd.f32 %v518_v14, %v492_v13 }
 0x27e   :  { %v926_v16 = vsel %vm496_vm8, %v2831_v15, -inf }
 0x27f   :  { %927 = vmax.xlane.f32.xlu1 %v926_v16 }
 0x28b   :  { %v572_v26 = vpop.f32.mrf.mxu2 }
 0x28c   :  { %v2847_v31 = vadd.f32 %v572_v26, %v492_v13 }
 0x28e   :  { %v932_v35 = vsel %vm496_vm8, %v2847_v31, -inf }
 0x295   :  { %v545_v20 = vpop.f32.mrf.mxu1 }
 0x296   :  { %v2839_v21 = vadd.f32 %v545_v20, %v492_v13 }
 0x298   :  { %v929_v25 = vsel %vm496_vm8, %v2839_v21, -inf }
 0x29a   :  { %v680_v45 = vpop.f32.mrf.mxu2 }
 0x29b   :  { %v2863_v47 = vadd.f32 %v680_v45, %v492_v13 }
 0x29d   :  { %v626_v17 = vpop.f32.mrf.mxu0  ;;  %v653_v27 = vpop.f32.mrf.mxu1  ;;  %v944_v48 = vsel %vm496_vm8, %v2863_v47, -inf }
 0x29e   :  { %v2835_v19 = vadd.f32 %v626_v17, %v492_v13  ;;  %v2849_v32 = vadd.f32 %v653_v27, %v492_v13 }
 0x2a0   :  { %v938_v18 = vsel %vm496_vm8, %v2835_v19, -inf  ;;  %v941_v34 = vsel %vm496_vm8, %v2849_v32, -inf }
 0x2a1   :  { %939 = vmax.xlane.f32.xlu0 %v938_v18 }
 0x2a5   :  { %v734_v22 = vpop.f32.mrf.mxu0 }
 0x2a6   :  { %v2841_v23 = vadd.f32 %v734_v22, %v492_v13 }
 0x2a8   :  { %v950_v24 = vsel %vm496_vm8, %v2841_v23, -inf }
 0x2a9   :  { %951 = vmax.xlane.f32.xlu2 %v950_v24  ;;  %930 = vmax.xlane.f32.xlu0 %v929_v25 }
 0x2ab   :  { %v599_v28 = vpop.f32.mrf.mxu3 }
 0x2ac   :  { %v2855_v37 = vadd.f32 %v599_v28, %v492_v13  ;;  %v788_v60 = vpop.f32.mrf.mxu2 }
 0x2ad   :  { %v2883_v61 = vadd.f32 %v788_v60, %v492_v13 }
 0x2ae   :  { %v935_v44 = vsel %vm496_vm8, %v2855_v37, -inf }
 0x2af   :  { %v956_v63 = vsel %vm496_vm8, %v2883_v61, -inf }
 0x2b1   :  { %942 = vmax.xlane.f32.xlu2 %v941_v34  ;;  %933 = vmax.xlane.f32.xlu0 %v932_v35 }
 0x2b3   :  { %v707_v36 = vpop.f32.mrf.mxu3 }
 0x2b4   :  { %v2875_v55 = vadd.f32 %v707_v36, %v492_v13 }
 0x2b5   :  { %v842_v41 = vpop.f32.mrf.mxu0 }
 0x2b6   :  { %v2857_v42 = vadd.f32 %v842_v41, %v492_v13  ;;  %v947_v58 = vsel %vm496_vm8, %v2875_v55, -inf }
 0x2b8   :  { %v962_v43 = vsel %vm496_vm8, %v2857_v42, -inf }
 0x2b9   :  { %963 = vmax.xlane.f32.xlu1 %v962_v43  ;;  %936 = vmax.xlane.f32.xlu2 %v935_v44 }
 0x2bb   :  { %v815_v46 = vpop.f32.mrf.mxu3 }
 0x2bc   :  { %v2885_v62 = vadd.f32 %v815_v46, %v492_v13 }
 0x2be   :  { %v959_v0 = vsel %vm496_vm8, %v2885_v62, -inf }
 0x2c1   :  { %945 = vmax.xlane.f32.xlu2 %v944_v48 }
 0x2c3   :  { %v923_v49 = vpop.f32.mrf.mxu3  ;;  %v896_v1 = vpop.f32.mrf.mxu2 }
 0x2c4   :  { %v2867_v50 = vadd.f32 %v923_v49, %v492_v13  ;;  %v2891_v2 = vadd.f32 %v896_v1, %v492_v13 }
 0x2c5   :  { %v761_v51 = vpop.f32.mrf.mxu1 }
 0x2c6   :  { %v2869_v52 = vadd.f32 %v761_v51, %v492_v13  ;;  %v971_v54 = vsel %vm496_vm8, %v2867_v50, -inf  ;;  %v968_v3 = vsel %vm496_vm8, %v2891_v2, -inf }
 0x2c8   :  { %v953_v53 = vsel %vm496_vm8, %v2869_v52, -inf }
 0x2c9   :  { %954 = vmax.xlane.f32.xlu1 %v953_v53  ;;  %972 = vmax.xlane.f32.xlu2 %v971_v54 }
 0x2cd   :  { %v869_v56 = vpop.f32.mrf.mxu1 }
 0x2ce   :  { %v2877_v57 = vadd.f32 %v869_v56, %v492_v13 }
 0x2d0   :  { %v965_v59 = vsel %vm496_vm8, %v2877_v57, -inf }
 0x2d1   :  { %948 = vmax.xlane.f32.xlu1 %v947_v58  ;;  %966 = vmax.xlane.f32.xlu0 %v965_v59 }
 0x2d9   :  { %957 = vmax.xlane.f32.xlu1 %v956_v63  ;;  %960 = vmax.xlane.f32.xlu0 %v959_v0 }
 0x2e1   :  { %969 = vmax.xlane.f32.xlu0 %v968_v3 }
 0x2f2   :  { %v928_v4 = vpop.xlane.xlu1 %927 }
 0x2f3   :  { %v974_v5 = vsub.f32 %v2831_v15, %v928_v4 }
 0x2f5   :  { %v990_v6 = vmul.f32 1.442695, %v974_v5 }
 0x2f7   :  { %2439 = vpow2.f32 %v990_v6 }
 0x2fd   :  { %v2896_v7 = vpop.eup %2439 }
 0x2fe   :  { %v1022_v8 = vsel %vm496_vm8, %v2896_v7, 0.0 }
 0x2ff   :  { %1023 = vadd.xlane.f32.xlu0 %v1022_v8 }
 0x314   :  { %v940_v11 = vpop.xlane.xlu0 %939 }
 0x315   :  { %v978_v12 = vsub.f32 %v2835_v19, %v940_v11 }
 0x317   :  { %v998_v13 = vmul.f32 1.442695, %v978_v12 }
 0x319   :  { %2441 = vpow2.f32 %v998_v13 }
 0x31c   :  { %v952_v14 = vpop.xlane.xlu2 %951  ;;  %v931_v16 = vpop.xlane.xlu0 %930 }
 0x31d   :  { %v982_v17 = vsub.f32 %v2841_v23, %v952_v14  ;;  %v975_v15 = vsub.f32 %v2839_v21, %v931_v16 }
 0x31f   :  { %v2905_v20 = vpop.eup %2441  ;;  %v1006_v18 = vmul.f32 1.442695, %v982_v17  ;;  %v992_v22 = vmul.f32 1.442695, %v975_v15 }
 0x320   :  { %v1034_v24 = vsel %vm496_vm8, %v2905_v20, 0.0 }
 0x321   :  { %2443 = vpow2.f32 %v1006_v18  ;;  %1035 = vadd.xlane.f32.xlu1 %v1034_v24 }
 0x322   :  { %2445 = vpow2.f32 %v992_v22 }
 0x324   :  { %v943_v25 = vpop.xlane.xlu2 %942  ;;  %v934_v19 = vpop.xlane.xlu0 %933 }
 0x325   :  { %v979_v26 = vsub.f32 %v2849_v32, %v943_v25  ;;  %v976_v27 = vsub.f32 %v2847_v31, %v934_v19 }
 0x327   :  { %v2911_v28 = vpop.eup %2443  ;;  %v1000_v23 = vmul.f32 1.442695, %v979_v26  ;;  %v994_v21 = vmul.f32 1.442695, %v976_v27 }
 0x328   :  { %v2913_v34 = vpop.eup %2445  ;;  %v1046_v35 = vsel %vm496_vm8, %v2911_v28, 0.0 }
 0x329   :  { %2447 = vpow2.f32 %v1000_v23  ;;  %1047 = vadd.xlane.f32.xlu0 %v1046_v35  ;;  %v1025_v36 = vsel %vm496_vm8, %v2913_v34, 0.0 }
 0x32a   :  { %2449 = vpow2.f32 %v994_v21  ;;  %1026 = vadd.xlane.f32.xlu2 %v1025_v36  ;;  %v2382_v36 = vpack.i.bf16 %v2780_v40, %v2772_v38  ;;  %v2387_v38 = vpack.i.bf16 %v2764_v33, %v2753_v29 }
 0x32c   :  { %v937_v41 = vpop.xlane.xlu2 %936  ;;  %v964_v48 = vpop.xlane.xlu1 %963 }
 0x32d   :  { %v977_v32 = vsub.f32 %v2855_v37, %v937_v41  ;;  %v986_v21 = vsub.f32 %v2857_v42, %v964_v48 }
 0x32f   :  { %v2920_v31 = vpop.eup %2447  ;;  %v996_v43 = vmul.f32 1.442695, %v977_v32  ;;  %v1014_v41 = vmul.f32 1.442695, %v986_v21  ;;  %v2377_v32 = vpack.i.bf16 %v2778_v39, %v2755_v30 }
 0x330   :  { %v2922_v44 = vpop.eup %2449  ;;  %v1037_v45 = vsel %vm496_vm8, %v2920_v31, 0.0 }
 0x331   :  { %1038 = vadd.xlane.f32.xlu0 %v1037_v45  ;;  %v1028_v46 = vsel %vm496_vm8, %v2922_v44, 0.0  ;;  %2451 = vpow2.f32 %v996_v43 }
 0x332   :  { %1029 = vadd.xlane.f32.xlu2 %v1028_v46 }
 0x334   :  { %v946_v49 = vpop.xlane.xlu2 %945 }
 0x335   :  { %v980_v51 = vsub.f32 %v2863_v47, %v946_v49 }
 0x337   :  { %v1002_v53 = vmul.f32 1.442695, %v980_v51  ;;  %v2929_v37 = vpop.eup %2451 }
 0x338   :  { %v1031_v54 = vsel %vm496_vm8, %v2929_v37, 0.0 }
 0x339   :  { %2453 = vpow2.f32 %v1002_v53  ;;  %1032 = vadd.xlane.f32.xlu1 %v1031_v54 }
 0x33c   :  { %v955_v56 = vpop.xlane.xlu1 %954  ;;  %v973_v58 = vpop.xlane.xlu2 %972 }
 0x33d   :  { %v983_v59 = vsub.f32 %v2869_v52, %v955_v56  ;;  %v989_v60 = vsub.f32 %v2867_v50, %v973_v58 }
 0x33f   :  { %v2935_v63 = vpop.eup %2453  ;;  %v1008_v0 = vmul.f32 1.442695, %v983_v59  ;;  %v1020_v1 = vmul.f32 1.442695, %v989_v60 }
 0x340   :  { %v1040_v47 = vsel %vm496_vm8, %v2935_v63, 0.0 }
 0x341   :  { %2455 = vpow2.f32 %v1008_v0  ;;  %1041 = vadd.xlane.f32.xlu1 %v1040_v47  ;;  %v2375_v0 = vunpack.i.l.bf16 %v2900_v9 }
 0x342   :  { %2457 = vpow2.f32 %v1020_v1 }
 0x344   :  { %v949_v3 = vpop.xlane.xlu1 %948  ;;  %v967_v4 = vpop.xlane.xlu0 %966 }
 0x345   :  { %v981_v5 = vsub.f32 %v2875_v55, %v949_v3  ;;  %v987_v6 = vsub.f32 %v2877_v57, %v967_v4  ;;  %v2376_v3 = vunpack.i.h.bf16 %v2900_v9 }
 0x347   :  { %v2941_v8 = vpop.eup %2455  ;;  %v1004_v52 = vmul.f32 1.442695, %v981_v5  ;;  %v1016_v50 = vmul.f32 1.442695, %v987_v6 }
 0x348   :  { %v2943_v11 = vpop.eup %2457  ;;  %v1049_v12 = vsel %vm496_vm8, %v2941_v8, 0.0 }
 0x349   :  { %2459 = vpow2.f32 %v1004_v52  ;;  %v1067_v13 = vsel %vm496_vm8, %v2943_v11, 0.0  ;;  %1050 = vadd.xlane.f32.xlu2 %v1049_v12 }
 0x34a   :  { %2461 = vpow2.f32 %v1016_v50  ;;  %1068 = vadd.xlane.f32.xlu1 %v1067_v13 }
 0x34c   :  { %v958_v14 = vpop.xlane.xlu1 %957  ;;  %v961_v55 = vpop.xlane.xlu0 %960 }
 0x34d   :  { %v984_v57 = vsub.f32 %v2883_v61, %v958_v14  ;;  %v985_v15 = vsub.f32 %v2885_v62, %v961_v55 }
 0x34f   :  { %v2950_v16 = vpop.eup %2459  ;;  %v1010_v17 = vmul.f32 1.442695, %v984_v57  ;;  %v1012_v25 = vmul.f32 1.442695, %v985_v15 }
 0x350   :  { %v2953_v18 = vpop.eup %2461  ;;  %v1043_v22 = vsel %vm496_vm8, %v2950_v16, 0.0 }
 0x351   :  { %2463 = vpow2.f32 %v1010_v17  ;;  %1044 = vadd.xlane.f32.xlu0 %v1043_v22  ;;  %v1061_v24 = vsel %vm496_vm8, %v2953_v18, 0.0 }
 0x352   :  { %1062 = vadd.xlane.f32.xlu2 %v1061_v24  ;;  %2465 = vpow2.f32 %v1012_v25 }
 0x354   :  { %v970_v19 = vpop.xlane.xlu0 %969 }
 0x355   :  { %v988_v61 = vsub.f32 %v2891_v2, %v970_v19 }
 0x357   :  { %v2959_v26 = vpop.eup %2463  ;;  %v1018_v27 = vmul.f32 1.442695, %v988_v61 }
 0x358   :  { %v1052_v62 = vsel %vm496_vm8, %v2959_v26, 0.0  ;;  %v2964_v23 = vpop.eup %2465 }
 0x359   :  { %1053 = vadd.xlane.f32.xlu0 %v1052_v62  ;;  %2467 = vpow2.f32 %v1018_v27  ;;  %v1055_v35 = vsel %vm496_vm8, %v2964_v23, 0.0 }
 0x35a   :  { %2469 = vpow2.f32 %v1014_v41 }
 0x35f   :  { %v2972_v2 = vpop.eup %2467 }
 0x360   :  { %v1064_v42 = vsel %vm496_vm8, %v2972_v2, 0.0  ;;  %v2979_v43 = vpop.eup %2469 }
 0x361   :  { %1056 = vadd.xlane.f32.xlu0 %v1055_v35  ;;  %v1058_v40 = vsel %vm496_vm8, %v2979_v43, 0.0 }
 0x363   :  { %2383 = vrot.lane.b32.xlu1 %v2382_v36, %s2537_s3 }
 0x369   :  { %1065 = vadd.xlane.f32.xlu0 %v1064_v42 }
 0x36a   :  { %2378 = vrot.lane.b32.xlu2 %v2377_v32, %s2537_s3 }
 0x371   :  { %1059 = vadd.xlane.f32.xlu0 %v1058_v40 }
 0x372   :  { %2388 = vrot.lane.b32.xlu2 %v2387_v38, %s2537_s3  ;;  %v1024_v45 = vpop.xlane.xlu0 %1023 }
 0x373   :  { %2471 = vrcp.f32 %v1024_v45 }
 0x379   :  { %v2472_v30 = vpop.eup %2471 }
 0x37a   :  { %v1086_v39 = vmul.f32 %v2472_v30, %v2896_v7 }
 0x37c   :  { %2148 = vmatmul.msk.f32.vlgmr.msra.gmra.mxu0 %vm496_vm8, %v1086_v39 }
 0x394   :  { %v1036_v46 = vpop.xlane.xlu1 %1035 }
 0x395   :  { %2473 = vrcp.f32 %v1036_v46 }
 0x39b   :  { %v2474_v48 = vpop.eup %2473 }
 0x39c   :  { %v1090_v49 = vmul.f32 %v2474_v48, %v2905_v20  ;;  %v1048_v51 = vpop.xlane.xlu0 %1047 }
 0x39d   :  { %v1027_v29 = vpop.xlane.xlu2 %1026 }
 0x39e   :  { %2475 = vrcp.f32 %v1027_v29  ;;  %2152 = vmatmul.msk.f32.vlgmr.msrb.gmra.mxu0 %vm496_vm8, %v1090_v49 }
 0x3a4   :  { %v2476_v33 = vpop.eup %2475  ;;  %v1039_v53 = vpop.xlane.xlu0 %1038 }
 0x3a5   :  { %v1087_v54 = vmul.f32 %v2476_v33, %v2913_v34  ;;  %v1030_v56 = vpop.xlane.xlu2 %1029  ;;  %2477 = vrcp.f32 %v1039_v53 }
 0x3a6   :  { %2479 = vrcp.f32 %v1030_v56 }
 0x3a7   :  { %2149 = vmatmul.msk.f32.vlgmr.msrb.gmra.mxu1 %vm496_vm8, %v1087_v54 }
 0x3ab   :  { %v2478_v7 = vpop.eup %2477 }
 0x3ac   :  { %v2480_v58 = vpop.eup %2479  ;;  %v1091_v59 = vmul.f32 %v2478_v7, %v2920_v31  ;;  %v1033_v60 = vpop.xlane.xlu1 %1032 }
 0x3ad   :  { %v1088_v20 = vmul.f32 %v2480_v58, %v2922_v44  ;;  %2481 = vrcp.f32 %v1033_v60 }
 0x3af   :  { %2150 = vmatmul.msk.f32.vlgmr.msrb.gmra.mxu2 %vm496_vm8, %v1088_v20  ;;  %2153 = vmatmul.msk.f32.vlgmr.msra.gmra.mxu1 %vm496_vm8, %v1091_v59 }
 0x3b0   :  { %1383 = vmatpush.msrb.mxu2 %v2375_v0 }
 0x3b3   :  { %v2482_v34 = vpop.eup %2481 }
 0x3b4   :  { %v1089_v1 = vmul.f32 %v2482_v34, %v2929_v37  ;;  %v1042_v47 = vpop.xlane.xlu1 %1041 }
 0x3b5   :  { %2483 = vrcp.f32 %v1042_v47  ;;  %v2313_v47 = vld [vmem:[%s3193_s4 + $0x10] sm:$0xff] }
 0x3b6   :  { %2151 = vmatmul.msk.f32.vlgmr.msra.gmra.mxu3 %vm496_vm8, %v1089_v1  ;;  %2485 = vrcp.f32 %v1048_v51  ;;  %v2314_v1 = vld [vmem:[%s3193_s4 + $0x18] sm:$0xff] }
 0x3b7   :  { %1409 = vmatpush.msra.mxu3 %v2376_v3  ;;  %v2312_v3 = vld [vmem:[%s3193_s4 + $0x8] sm:$0xff] }
 0x3bb   :  { %v2484_v31 = vpop.eup %2483 }
 0x3bc   :  { %v1051_v44 = vpop.xlane.xlu2 %1050  ;;  %v1092_v4 = vmul.f32 %v2484_v31, %v2935_v63  ;;  %v2486_v52 = vpop.eup %2485  ;;  %v2311_v31 = vld [vmem:[%s3193_s4] sm:$0xff] }
 0x3bd   :  { %v1069_v13 = vpop.xlane.xlu1 %1068  ;;  %v1094_v63 = vmul.f32 %v2486_v52, %v2911_v28 }
 0x3be   :  { %2154 = vmatmul.msk.f32.vlgmr.msra.gmra.mxu2 %vm496_vm8, %v1092_v4 }
 0x3c4   :  { %v1045_v5 = vpop.xlane.xlu0 %1044 }
 0x3c5   :  { %v1063_v6 = vpop.xlane.xlu2 %1062  ;;  %2487 = vrcp.f32 %v1045_v5 }
 0x3c6   :  { %2489 = vrcp.f32 %v1051_v44 }
 0x3cb   :  { %v2488_v37 = vpop.eup %2487 }
 0x3cc   :  { %v2490_v50 = vpop.eup %2489  ;;  %v1093_v9 = vmul.f32 %v2488_v37, %v2950_v16  ;;  %v1054_v12 = vpop.xlane.xlu0 %1053 }
 0x3cd   :  { %v2379_v14 = vpop.permute.xlu2 %2378  ;;  %2491 = vrcp.f32 %v1054_v12  ;;  %v1095_v17 = vmul.f32 %v2490_v50, %v2941_v8 }
 0x3ce   :  { %v2381_v55 = vunpack.i.h.bf16 %v2379_v14  ;;  %v2380_v57 = vunpack.i.l.bf16 %v2379_v14  ;;  %2155 = vmatmul.msk.f32.vlgmr.msrb.gmra.mxu3 %vm496_vm8, %v1093_v9  ;;  %2493 = vrcp.f32 %v1063_v6 }
 0x3d0   :  { %1331 = vmatpush.msra.mxu0 %v2380_v57  ;;  %1357 = vmatpush.msrb.mxu1 %v2381_v55 }
 0x3d1   :  { %2156 = vmatmul.msk.f32.vlgmr.msra.gmra.mxu0 %vm496_vm8, %v1094_v63  ;;  %2157 = vmatmul.msk.f32.vlgmr.msrb.gmra.mxu1 %vm496_vm8, %v1095_v17 }
 0x3d3   :  { %v2492_v16 = vpop.eup %2491 }
 0x3d4   :  { %v1096_v15 = vmul.f32 %v2492_v16, %v2959_v26  ;;  %v1057_v22 = vpop.xlane.xlu0 %1056  ;;  %v2494_v24 = vpop.eup %2493 }
 0x3d5   :  { %v2384_v25 = vpop.permute.xlu1 %2383  ;;  %v2389_v19 = vpop.permute.xlu2 %2388  ;;  %2495 = vrcp.f32 %v1057_v22  ;;  %v1099_v8 = vmul.f32 %v2494_v24, %v2953_v18 }
 0x3d6   :  { %v2386_v61 = vunpack.i.h.bf16 %v2384_v25  ;;  %v2385_v62 = vunpack.i.l.bf16 %v2384_v25  ;;  %v2391_v28 = vunpack.i.h.bf16 %v2389_v19  ;;  %v2390_v27 = vunpack.i.l.bf16 %v2389_v19  ;;  %2158 = vmatmul.msk.f32.vlgmr.msrb.gmra.mxu2 %vm496_vm8, %v1096_v15 }
 0x3d7   :  { %2497 = vrcp.f32 %v1069_v13 }
 0x3d8   :  { %1435 = vmatpush.msrb.mxu0 %v2390_v27  ;;  %1461 = vmatpush.msra.mxu1 %v2391_v28 }
 0x3d9   :  { %1487 = vmatpush.msra.mxu2 %v2385_v62  ;;  %1513 = vmatpush.msrb.mxu3 %v2386_v61 }
 0x3da   :  { %2161 = vmatmul.msk.f32.vlgmr.msra.gmra.mxu1 %vm496_vm8, %v1099_v8  ;;  %1638 = vmatpush.bf16.msra.mxu0 %v2314_v1  ;;  %v2321_v1 = vld [vmem:[%s3197_s8 + $0x34] sm:$0xf] }
 0x3db   :  { %v2496_v26 = vpop.eup %2495 }
 0x3dc   :  { %v1097_v21 = vmul.f32 %v2496_v26, %v2964_v23  ;;  %v1066_v35 = vpop.xlane.xlu0 %1065 }
 0x3dd   :  { %2499 = vrcp.f32 %v1066_v35  ;;  %v2498_v36 = vpop.eup %2497 }
 0x3de   :  { %2159 = vmatmul.msk.f32.vlgmr.msra.gmra.mxu3 %vm496_vm8, %v1097_v21  ;;  %v1101_v32 = vmul.f32 %v2498_v36, %v2943_v11  ;;  %1639 = vmatpush.bf16.msra.mxu0 %v2313_v47 }
 0x3e2   :  { %1640 = vmatpush.bf16.msra.mxu0 %v2312_v3  ;;  %v2209_v3 = vld [vmem:[%s3197_s8 + $0x38] sm:$0xf0] }
 0x3e3   :  { %v2500_v41 = vpop.eup %2499 }
 0x3e4   :  { %v1100_v18 = vmul.f32 %v2500_v41, %v2972_v2  ;;  %v1060_v42 = vpop.xlane.xlu0 %1059 }
 0x3e5   :  { %2501 = vrcp.f32 %v1060_v42 }
 0x3e6   :  { %2162 = vmatmul.msk.f32.vlgmr.msra.gmra.mxu2 %vm496_vm8, %v1100_v18  ;;  %2163 = vmatmul.msk.f32.vlgmr.msrb.gmra.mxu3 %vm496_vm8, %v1101_v32 }
 0x3e7   :  { %1641 = vmatpush.bf16.msra.mxu0 %v2311_v31  ;;  %v2212_v31 = vor.u32 %v2321_v1, %v2209_v3  ;;  %v2324_v1 = vld [vmem:[%s3199_s10 + $0x8] sm:$0xff]  ;;  %v2323_v3 = vld [vmem:[%s3199_s10] sm:$0xff] }
 0x3e9   :  { %1782 = vmatpush.bf16.msrb.mxu2 %v2212_v31  ;;  %v2332_v31 = vld [vmem:[%s3199_s10 + $0x48] sm:$0xff] }
 0x3eb   :  { %v2502_v38 = vpop.eup %2501 }
 0x3ec   :  { %v1098_v40 = vmul.f32 %v2502_v38, %v2979_v43 }
 0x3ee   :  { %2160 = vmatmul.msk.f32.vlgmr.msrb.gmra.mxu0 %vm496_vm8, %v1098_v40 }
 0x3f9   :  { %v1125_v23 = vpop.f32.mrf.mxu0 }
 0x41b   :  { %v1229_v30 = vpop.f32.mrf.mxu0 }
 0x424   :  { %v1151_v45 = vpop.f32.mrf.mxu1 }
 0x42c   :  { %v1255_v39 = vpop.f32.mrf.mxu1 }
 0x42d   :  { %v2392_v46 = vpack.i.bf16 %v1255_v39, %v1229_v30  ;;  %v2507_v39 = vld [vmem:[%s3189_s0] sm:$0xff] }
 0x42f   :  { %2393 = vrot.lane.b32.xlu1 %v2392_v46, %s2539_s20 }
 0x432   :  { %v1177_v11 = vpop.f32.mrf.mxu2 }
 0x439   :  { %v1203_v2 = vpop.f32.mrf.mxu3 }
 0x43a   :  { %v2402_v48 = vpack.i.bf16 %v1203_v2, %v1177_v11 }
 0x43c   :  { %2403 = vrot.lane.b32.xlu0 %v2402_v48, %s2540_s21 }
 0x441   :  { %v1281_v33 = vpop.f32.mrf.mxu2 }
 0x44e   :  { %v1333_v49 = vpop.f32.mrf.mxu0  ;;  %v1359_v51 = vpop.f32.mrf.mxu1 }
 0x44f   :  { %v2397_v29 = vpack.i.bf16 %v1359_v51, %v1333_v49  ;;  %v2508_v49 = vld [vmem:[%s3189_s0 + $0x8] sm:$0xff]  ;;  %s2546_s0 = smov [#allocation2]  }
 0x451   :  { %2398 = vrot.lane.b32.xlu1 %v2397_v29, %s2541_s22  ;;  %v1307_v43 = vpop.f32.mrf.mxu3 }
 0x452   :  { %v2407_v53 = vpack.i.bf16 %v1307_v43, %v1281_v33 }
 0x454   :  { %2408 = vrot.lane.b32.xlu2 %v2407_v53, %s2542_s23 }
 0x457   :  { %v1463_v60 = vpop.f32.mrf.mxu1 }
 0x459   :  { %v1385_v54 = vpop.f32.mrf.mxu2 }
 0x461   :  { %v1411_v56 = vpop.f32.mrf.mxu3 }
 0x462   :  { %v2412_v7 = vpack.i.bf16 %v1411_v56, %v1385_v54 }
 0x464   :  { %2413 = vrot.lane.b32.xlu2 %v2412_v7, %s2543_s24 }
 0x469   :  { %v1489_v58 = vpop.f32.mrf.mxu2  ;;  %v1515_v59 = vpop.f32.mrf.mxu3 }
 0x46a   :  { %v2422_v20 = vpack.i.bf16 %v1515_v59, %v1489_v58 }
 0x46b   :  { %v1437_v0 = vpop.f32.mrf.mxu0 }
 0x46c   :  { %v2417_v34 = vpack.i.bf16 %v1463_v60, %v1437_v0  ;;  %2423 = vrot.lane.b32.xlu0 %v2422_v20, %s2544_s25  ;;  %v2207_v0 = vld [vmem:[%s3197_s8 + $0x30] sm:$0xf] }
 0x46e   :  { %2418 = vrot.lane.b32.xlu1 %v2417_v34, %s2545_s26  ;;  %v2322_v34 = vld [vmem:[%s3197_s8 + $0x34] sm:$0xf0] }
 0x46f   :  { %v2208_v47 = vor.u32 %v2322_v34, %v2207_v0  ;;  %v2335_v0 = vld [vmem:[%s3199_s10 + $0x60] sm:$0xff]  ;;  %v2334_v34 = vld [vmem:[%s3199_s10 + $0x58] sm:$0xff] }
 0x471   :  { %1768 = vmatpush.bf16.msrb.mxu1 %v2208_v47  ;;  %v2333_v47 = vld [vmem:[%s3199_s10 + $0x50] sm:$0xff] }
 0x4a1   :  { %v2394_v44 = vpop.permute.xlu1 %2393 }
 0x4a2   :  { %v2396_v12 = vunpack.i.h.bf16 %v2394_v44  ;;  %v2395_v13 = vunpack.i.l.bf16 %v2394_v44  ;;  %v2199_v44 = vld [vmem:[%s3197_s8 + $0x20] sm:$0xf] }
 0x4ae   :  { %v2404_v4 = vpop.permute.xlu0 %2403  ;;  %v2409_v52 = vpop.permute.xlu2 %2408 }
 0x4af   :  { %v2406_v5 = vunpack.i.h.bf16 %v2404_v4  ;;  %v2405_v6 = vunpack.i.l.bf16 %v2404_v4  ;;  %v2411_v17 = vunpack.i.h.bf16 %v2409_v52  ;;  %v2410_v16 = vunpack.i.l.bf16 %v2409_v52  ;;  %v2320_v4 = vld [vmem:[%s3197_s8 + $0x24] sm:$0xf0]  ;;  %v2201_v52 = vld [vmem:[%s3197_s8 + $0x28] sm:$0xf0] }
 0x4b1   :  { %v1575_v37 = vsel %vm496_vm8, %v1151_v45, %v2406_v5  ;;  %v1574_v50 = vsel %vm496_vm8, %v1125_v23, %v2405_v6  ;;  %v2429_v23 = vld [vmem:[%s3194_s5] ss:$0 sm:$0xff]  ;;  %v2319_v5 = vld [vmem:[%s3197_s8 + $0x24] sm:$0xf]  ;;  %v2200_v6 = vor.u32 %v2320_v4, %v2199_v44  ;;  %s1966_s5 = sshll.u32 %s2546_s0, 4  ;;  %s1967_s5 = int_to_ptr.vmem [resolvable:$true] %s1966_s5 }
 0x4b2   :  { %v1578_v14 = vsel %vm1576_vm10, %v1575_v37, %v2396_v12  ;;  %v1577_v55 = vsel %vm1576_vm10, %v1574_v50, %v2395_v13  ;;  %v2204_v37 = vor.u32 %v2319_v5, %v2201_v52  ;;  %v2191_v50 = vld [vmem:[%s3197_s8 + $0x10] sm:$0xf]  ;;  %v2317_v12 = vld [vmem:[%s3197_s8 + $0x14] sm:$0xf]  ;;  %v2331_v44 = vld [vmem:[%s3199_s10 + $0x40] sm:$0xff] }
 0x4b3   :  { %v1580_v22 = vsel %vm1579_vm11, %v1577_v55, %v2410_v16  ;;  %v1581_v24 = vsel %vm1579_vm11, %v1578_v14, %v2411_v17  ;;  %1769 = vmatpush.bf16.msrb.mxu1 %v2200_v6  ;;  %v2193_v55 = vld [vmem:[%s3197_s8 + $0x18] sm:$0xf0]  ;;  %v2183_v16 = vld [vmem:[%s3197_s8] sm:$0xf] }
 0x4b4   :  { %1783 = vmatpush.bf16.msrb.mxu2 %v2204_v37  ;;  %v1715_v4 = vld [vmem:[%s3198_s9] sm:$0x3] }
 0x4b5   :  { %v1717_v6 = vperm.slane %v1715_v4, 0 }
 0x4be   :  { %v2414_v15 = vpop.permute.xlu2 %2413 }
 0x4bf   :  { %v2416_v62 = vunpack.i.h.bf16 %v2414_v15  ;;  %v2415_v28 = vunpack.i.l.bf16 %v2414_v15  ;;  %v2316_v15 = vld [vmem:[%s3197_s8 + $0x4] sm:$0xf0] }
 0x4c3   :  { %v2399_v9 = vpop.permute.xlu1 %2398 }
 0x4c4   :  { %v2401_v57 = vunpack.i.h.bf16 %v2399_v9  ;;  %v2400_v63 = vunpack.i.l.bf16 %v2399_v9  ;;  %v2318_v9 = vld [vmem:[%s3197_s8 + $0x14] sm:$0xf0] }
 0x4c5   :  { %v2192_v14 = vor.u32 %v2318_v9, %v2191_v50  ;;  %v1718_v9 = vperm.slane %v1715_v4, 1 }
 0x4c6   :  { %v1583_v25 = vsel %vm1582_vm12, %v1580_v22, %v2400_v63  ;;  %v1584_v19 = vsel %vm1582_vm12, %v1581_v24, %v2401_v57  ;;  %v2196_v63 = vor.u32 %v2317_v12, %v2193_v55  ;;  %v2184_v22 = vor.u32 %v2316_v15, %v2183_v16  ;;  %v2315_v24 = vld [vmem:[%s3197_s8 + $0x4] sm:$0xf] }
 0x4c7   :  { %v1586_v36 = vsel %vm1585_vm13, %v1583_v25, %v2415_v28  ;;  %v1587_v41 = vsel %vm1585_vm13, %v1584_v19, %v2416_v62  ;;  %1770 = vmatpush.bf16.msrb.mxu1 %v2192_v14  ;;  %v2185_v25 = vld [vmem:[%s3197_s8 + $0x8] sm:$0xf0]  ;;  %v2338_v62 = vld [vmem:[%s3199_s10 + $0x78] sm:$0xff] }
 0x4c8   :  { %1784 = vmatpush.bf16.msrb.mxu2 %v2196_v63  ;;  %v2188_v19 = vor.u32 %v2315_v24, %v2185_v25  ;;  %1944 = vmatpush.bf16.msrb.mxu0 %v2338_v62  ;;  %v2432_v24 = vld [vmem:[%s3200_s11] ss:$0 sm:$0xff]  ;;  %s2547_s11 = smov 128  }
 0x4cb   :  { %1771 = vmatpush.bf16.msrb.mxu1 %v2184_v22 }
 0x4cc   :  { %1785 = vmatpush.bf16.msrb.mxu2 %v2188_v19 }
 0x4de   :  { %v2424_v61 = vpop.permute.xlu0 %2423 }
 0x4df   :  { %v2426_v21 = vunpack.i.h.bf16 %v2424_v61  ;;  %v2425_v35 = vunpack.i.l.bf16 %v2424_v61  ;;  %v2330_v61 = vld [vmem:[%s3199_s10 + $0x38] sm:$0xff] }
 0x4e0   :  { %v2419_v27 = vpop.permute.xlu1 %2418  ;;  %1930 = vmatpush.bf16.msra.mxu3 %v2330_v61 }
 0x4e1   :  { %v2421_v8 = vunpack.i.h.bf16 %v2419_v27  ;;  %v2420_v26 = vunpack.i.l.bf16 %v2419_v27 }
 0x4e3   :  { %v1589_v32 = vsel %vm1588_vm14, %v1586_v36, %v2420_v26  ;;  %v1590_v18 = vsel %vm1588_vm14, %v1587_v41, %v2421_v8  ;;  %v2329_v8 = vld [vmem:[%s3199_s10 + $0x30] sm:$0xff]  ;;  %v2328_v41 = vld [vmem:[%s3199_s10 + $0x28] sm:$0xff] }
 0x4e4   :  { %v1592_v42 = vsel %vm1591_vm15, %v1589_v32, %v2425_v35  ;;  %v1593_v38 = vsel %vm1591_vm15, %v1590_v18, %v2426_v21  ;;  %v2337_v26 = vld [vmem:[%s3199_s10 + $0x70] sm:$0xff]  ;;  %1931 = vmatpush.bf16.msra.mxu3 %v2329_v8 }
 0x4e5   :  { %v1594_v40 = vpack.c.bf16 %v1593_v38, %v1592_v42  ;;  %1945 = vmatpush.bf16.msrb.mxu0 %v2337_v26  ;;  %v2327_v42 = vld [vmem:[%s3199_s10 + $0x20] sm:$0xff] }
 0x4e7   :  { %2180 = vmatmul.msk.bf16.vlgmr.msra.gmra.mxu0 %vm47_vm0, %v1594_v40 }
 0x4e8   :  { %1932 = vmatpush.bf16.msra.mxu3 %v2328_v41 }
 0x4ec   :  { %1933 = vmatpush.bf16.msra.mxu3 %v2327_v42 }
 0x564   :  { %v1643_v45 = vpop.f32.mrf.mxu0 }
 0x565   :  { %v1644_v30 = vadd.f32 %v2429_v23, %v1643_v45 }
 0x567   :  { %v3042_v46 = vadd.f32 %v2507_v39, %v1644_v30 }
 0x569   :  { %v1652_v11 = vsel %vm47_vm0, %v3042_v46, 0.0 }
 0x56a   :  { %1653 = vadd.xlane.f32.xlu2 %v1652_v11 }
 0x56c   :  { %v1645_v2 = vpop.f32.mrf.mxu0 }
 0x56d   :  { %v1646_v48 = vadd.f32 %v2429_v23, %v1645_v2 }
 0x56f   :  { %v3049_v51 = vadd.f32 %v2508_v49, %v1646_v48  ;;  %v2430_v48 = vld [vmem:[%s3195_s6] ss:$0 sm:$0xff] }
 0x571   :  { %v1655_v29 = vsel %vm47_vm0, %v3049_v51, 0.0 }
 0x572   :  { %1656 = vadd.xlane.f32.xlu1 %v1655_v29 }
 0x5dd   :  { %v1654_v33 = vpop.xlane.xlu2 %1653 }
 0x5de   :  { %v1658_v43 = vmul.f32 %v1654_v33, %v2621_v10 }
 0x5e0   :  { %v3055_v53 = vsub.f32 %v3042_v46, %v1658_v43  ;;  %v2431_v43 = vld [vmem:[%s3196_s7] ss:$0 sm:$0xff] }
 0x5e2   :  { %v1662_v54 = vmul.f32 %v3055_v53, %v3055_v53 }
 0x5e4   :  { %v1664_v56 = vsel %vm47_vm0, %v1662_v54, 0.0 }
 0x5e5   :  { %v1657_v7 = vpop.xlane.xlu1 %1656  ;;  %1665 = vadd.xlane.f32.xlu0 %v1664_v56 }
 0x5e6   :  { %v1659_v58 = vmul.f32 %v1657_v7, %v2621_v10 }
 0x5e8   :  { %v3062_v59 = vsub.f32 %v3049_v51, %v1659_v58 }
 0x5ea   :  { %v1663_v20 = vmul.f32 %v3062_v59, %v3062_v59 }
 0x5ec   :  { %v1667_v60 = vsel %vm47_vm0, %v1663_v20, 0.0 }
 0x5ed   :  { %1668 = vadd.xlane.f32.xlu2 %v1667_v60 }
 0x658   :  { %v1666_v13 = vpop.xlane.xlu0 %1665 }
 0x659   :  { %v1670_v57 = vmul.f32 %v1666_v13, %v2621_v10 }
 0x65b   :  { %v1672_v17 = vadd.f32 1e-05, %v1670_v57 }
 0x65d   :  { %2503 = vrsqrt.f32 %v1672_v17  ;;  %vm1680_vm2 = vweird.f32 %v1672_v17 }
 0x660   :  { %v1669_v28 = vpop.xlane.xlu2 %1668 }
 0x661   :  { %v1671_v27 = vmul.f32 %v1669_v28, %v2621_v10  ;;  %v2336_v10 = vld [vmem:[%s3199_s10 + $0x68] sm:$0xff] }
 0x662   :  { %1946 = vmatpush.bf16.msrb.mxu0 %v2336_v10 }
 0x663   :  { %v2504_v21 = vpop.eup %2503  ;;  %v1673_v35 = vadd.f32 1e-05, %v1671_v27 }
 0x664   :  { %v1675_v36 = vmul.f32 %v2504_v21, %v1672_v17  ;;  %vm1681_vm1 = vweird.f32 %v2504_v21 }
 0x665   :  { %2505 = vrsqrt.f32 %v1673_v35  ;;  %vm1682_vm3 = vmor %vm1680_vm2, %vm1681_vm1  ;;  %vm1690_vm5 = vweird.f32 %v1673_v35 }
 0x666   :  { %v1676_v32 = vmul.f32 %v2504_v21, %v1675_v36  ;;  %1947 = vmatpush.bf16.msrb.mxu0 %v2335_v0 }
 0x668   :  { %v1677_v18 = vmul.f32 0.5, %v1676_v32 }
 0x66a   :  { %v1678_v38 = vsub.f32 1.5, %v1677_v18  ;;  %1948 = vmatpush.bf16.msrb.mxu0 %v2334_v34 }
 0x66b   :  { %v2506_v40 = vpop.eup %2505 }
 0x66c   :  { %v1679_v23 = vmul.f32 %v2504_v21, %v1678_v38  ;;  %v1685_v45 = vmul.f32 %v2506_v40, %v1673_v35  ;;  %vm1691_vm4 = vweird.f32 %v2506_v40 }
 0x66d   :  { %vm1692_vm6 = vmor %vm1690_vm5, %vm1691_vm4 }
 0x66e   :  { %v1686_v30 = vmul.f32 %v2506_v40, %v1685_v45  ;;  %v1683_v39 = vsel %vm1682_vm3, %v2504_v21, %v1679_v23  ;;  %1949 = vmatpush.bf16.msrb.mxu0 %v2333_v47 }
 0x66f   :  { %v1694_v49 = vmul.f32 %v1683_v39, %v3055_v53  ;;  %v2326_v53 = vld [vmem:[%s3199_s10 + $0x18] sm:$0xff] }
 0x670   :  { %v1687_v11 = vmul.f32 0.5, %v1686_v30  ;;  %1934 = vmatpush.bf16.msra.mxu3 %v2326_v53 }
 0x671   :  { %v1699_v54 = vmul.f32 %v2430_v48, %v1694_v49 }
 0x672   :  { %v1688_v2 = vsub.f32 1.5, %v1687_v11  ;;  %1950 = vmatpush.bf16.msrb.mxu0 %v2332_v31 }
 0x673   :  { %v1704_v58 = vadd.f32 %v2431_v43, %v1699_v54 }
 0x674   :  { %v1689_v29 = vmul.f32 %v2506_v40, %v1688_v2 }
 0x676   :  { %v1693_v33 = vsel %vm1692_vm6, %v2506_v40, %v1689_v29  ;;  %1951 = vmatpush.bf16.msrb.mxu0 %v2331_v44 }
 0x677   :  { %v1695_v56 = vmul.f32 %v1693_v33, %v3062_v59  ;;  %v2325_v59 = vld [vmem:[%s3199_s10 + $0x10] sm:$0xff] }
 0x678   :  { %1935 = vmatpush.bf16.msra.mxu3 %v2325_v59 }
 0x679   :  { %v1700_v7 = vmul.f32 %v2430_v48, %v1695_v56 }
 0x67b   :  { %v1705_v20 = vadd.f32 %v2431_v43, %v1700_v7 }
 0x67c   :  { %1936 = vmatpush.bf16.msra.mxu3 %v2324_v1 }
 0x67d   :  { %v1706_v60 = vpack.c.bf16 %v1705_v20, %v1704_v58 }
 0x67f   :  { %2213 = vmatmul.msk.bf16.vlgmr.msrb.gmra.mxu1 %vm47_vm0, %v1706_v60  ;;  %2214 = vmatmul.msk.bf16.vlgmr.msrb.gmra.mxu2 %vm47_vm0, %v1706_v60 }
 0x680   :  { %1937 = vmatpush.bf16.msra.mxu3 %v2323_v3 }
 0x6fc   :  { %v1773_v5 = vpop.f32.mrf.mxu1 }
 0x6fd   :  { %v1774_v37 = vadd.f32 %v1773_v5, %v1717_v6 }
 0x6ff   :  { %v1792_v13 = vmax.f32 %v1774_v37, 0.0 }
 0x702   :  { %v1787_v52 = vpop.f32.mrf.mxu2 }
 0x703   :  { %v1788_v55 = vadd.f32 %v1787_v52, %v1718_v9 }
 0x704   :  { %v1775_v50 = vpop.f32.mrf.mxu1 }
 0x705   :  { %v1776_v12 = vadd.f32 %v1775_v50, %v1717_v6  ;;  %v1793_v16 = vmax.f32 %v1788_v55, 0.0 }
 0x707   :  { %v1794_v14 = vmax.f32 %v1776_v12, 0.0 }
 0x709   :  { %v1796_v57 = vpack.c.bf16 %v1794_v14, %v1792_v13 }
 0x70a   :  { %v1789_v63 = vpop.f32.mrf.mxu2 }
 0x70b   :  { %v1790_v17 = vadd.f32 %v1789_v63, %v1718_v9  ;;  %1938 = vmatmul.bf16.vlgmr.msra.gmra.mxu3 %v1796_v57 }
 0x70d   :  { %v1795_v15 = vmax.f32 %v1790_v17, 0.0 }
 0x70f   :  { %v1797_v22 = vpack.c.bf16 %v1795_v15, %v1793_v16 }
 0x711   :  { %1952 = vmatmul.bf16.vlgmr.msrb.gmra.mxu0 %v1797_v22 }
 0x78e   :  { %v1939_v25 = vpop.f32.mrf.mxu3  ;;  %v1953_v19 = vpop.f32.mrf.mxu0 }
 0x78f   :  { %v1940_v61 = vadd.f32 %v2432_v24, %v1939_v25 }
 0x791   :  { %v1954_v62 = vadd.f32 %v1953_v19, %v1940_v61 }
 0x793   :  { %v1958_v28 = vadd.f32 %v1954_v62, %v3042_v46 }
 0x795   :  { %1960 = vst.msk [vmem:[#allocation2] sm:$0xff] %vm47_vm0, %v1958_v28 }
 0x796   :  { %v1941_v27 = vpop.f32.mrf.mxu3  ;;  %v1955_v26 = vpop.f32.mrf.mxu0 }
 0x797   :  { %v1942_v8 = vadd.f32 %v2432_v24, %v1941_v27 }
 0x799   :  { %v1956_v21 = vadd.f32 %v1955_v26, %v1942_v8 }
 0x79b   :  { %v1959_v35 = vadd.f32 %v1956_v21, %v3049_v51 }
 0x79d   :  { %1961 = vst.msk [vmem:[#allocation2 + $0x8] sm:$0xff] %vm47_vm0, %v1959_v35 }
 0x79e   :  { %1974 = dma.vmem_to_hbm [thread:$0]  %s1967_s5, 256, %s1969_s19, [#allocation3], %s2547_s11, %s2547_s11, %s2540_s21  }
 0x79f   :  { %2533 = dma.done.wait [#allocation3], 256  }
 0x7a0   :  { %2534 = vsyncadd [#allocation3], 4294967040 }
 0x7a1   :  { %1979 = vsyncpa [#allocation3], 1 }

</bundles_post_ra>
